<compile_context>
chip_gen: v7x
topology: tpu7x:2x2x1
jax: 0.10.0
libtpu: 0.0.40
codegen_flags: <defaults>
</compile_context>

<pallas_src>
import numpy as np
import jax
import jax.numpy as jnp
from jax import lax
from jax.experimental import pallas as pl
from jax.experimental.pallas import tpu as pltpu

NUM_CLASSES = 101

# Resident (constant-index) operands: single-buffer them if the API supports it.
_RESIDENT_KW = {"pipeline_mode": pl.Buffered(1)} if hasattr(pl, "Buffered") else {}


def _round_up(v, m):
    return (v + m - 1) // m * m


def _pick_chunk(seq, max_chunk=16):
    """Largest divisor of seq that is <= max_chunk (timesteps per grid step)."""
    for t in range(min(seq, max_chunk), 0, -1):
        if seq % t == 0:
            return t
    return 1


# ------------------------------- Pallas kernel ------------------------------


def lstm_fc_kernel(g0_ref, whh0_ref, w1_ref, b1_ref, fcw_ref, fcb_ref,
                   out_ref, h_ref, c_ref):
    """One chunk of T timesteps of a 2-layer LSTM per grid step; FC on the last step.

    Shapes (G = round_up(4H, 128), Np = round_up(101, 128)):
      g0_ref   : (T, Bp, G)  f32   precomputed x@Wih0 + b0 for this chunk (pipelined)
      whh0_ref : (H, G)      bf16  layer-0 recurrent weight (gate order i|f|g|o packed)
      w1_ref   : (2H, G)     bf16  layer-1 fused weight [Wih1 ; Whh1]
      b1_ref   : (Bp, G)     f32   layer-1 bias, pre-broadcast
      fcw_ref  : (H, Np) bf16 / fcb_ref : (1, Np) f32
      out_ref  : (Bp, Np)    f32   fc(h_n[layer 1])
      h_ref    : (2, Bp, H)  bf16  VMEM scratch (persists across grid steps)
      c_ref    : (2, Bp, H)  f32   VMEM scratch (persists across grid steps)
    """
    step = pl.program_id(0)
    tchunk = g0_ref.shape[0]
    hsz = c_ref.shape[2]

    @pl.when(step == 0)
    def _():
        h_ref[...] = jnp.zeros_like(h_ref)   # hidden_initial: zeros
        c_ref[...] = jnp.zeros_like(c_ref)

    # Hoist resident-operand loads out of the unrolled chunk loop.
    whh0 = whh0_ref[...]
    w1 = w1_ref[...]
    b1 = b1_ref[...]

    def sig(v):
        # sigmoid via EUP tanh (frees VALU slots vs. divide-based form).
        return 0.5 * jnp.tanh(0.5 * v) + 0.5

    def act(gates, c_prev):
        # PyTorch gate order: i, f, g, o (packed contiguously in lanes).
        i = sig(gates[:, 0 * hsz:1 * hsz])
        f = sig(gates[:, 1 * hsz:2 * hsz])
        g = jnp.tanh(gates[:, 2 * hsz:3 * hsz])
        o = sig(gates[:, 3 * hsz:4 * hsz])
        c_new = f * c_prev + i * g
        h_new = o * jnp.tanh(c_new)
        return h_new, c_new

    def body(t, carry):
        h0, c0, h1, c1 = carry                                    # h bf16, c f32
        # layer 0: input projection precomputed -> only the recurrent matmul here.
        gates0 = g0_ref[t] + jnp.dot(h0, whh0, preferred_element_type=jnp.float32)
        h0f, c0n = act(gates0, c0)
        h0n = h0f.astype(jnp.bfloat16)
        # layer 1: fused [x_t | h_prev] @ [Wih1 ; Whh1].
        lhs1 = jnp.concatenate([h0n, h1], axis=1)
        gates1 = jnp.dot(lhs1, w1, preferred_element_type=jnp.float32) + b1
        h1f, c1n = act(gates1, c1)
        return h0n, c0n, h1f.astype(jnp.bfloat16), c1n

    carry = (h_ref[0], c_ref[0], h_ref[1], c_ref[1])
    h0, c0, h1, c1 = lax.fori_loop(0, tchunk, body, carry, unroll=True)
    h_ref[0] = h0
    c_ref[0] = c0
    h_ref[1] = h1
    c_ref[1] = c1

    @pl.when(step == pl.num_programs(0) - 1)
    def _():
        out_ref[...] = (jnp.dot(h1, fcw_ref[...], preferred_element_type=jnp.float32)
                        + fcb_ref[...])


# ------------------------- weight packing / forward --------------------------


@jax.jit
def lstm_ver1_forward(params, x):
    """x: (batch, seq, input_size) (batch_first=True) -> (batch, 101)."""
    b, seq, in_dim = x.shape
    h = params["w_hh_l0"].shape[1]
    four_h = 4 * h

    bp = _round_up(max(b, 1), 16)              # full bf16 sublane packing
    g = _round_up(four_h, 128)                 # packed gate width (i|f|g|o contiguous)
    npad = _round_up(NUM_CLASSES, 128)
    tchunk = _pick_chunk(seq)

    # --- hoisted layer-0 input projection: one big (S*Bp, I)x(I, 4H) matmul + bias ---
    x_tm = jnp.transpose(x, (1, 0, 2)).astype(jnp.bfloat16)          # (S, B, I)
    x_tm = jnp.pad(x_tm, ((0, 0), (0, bp - b), (0, 0)))              # (S, Bp, I)
    g0 = jnp.einsum("sbi,io->sbo", x_tm,
                    jnp.transpose(params["w_ih_l0"]).astype(jnp.bfloat16),
                    preferred_element_type=jnp.float32)               # (S, Bp, 4H)
    g0 = g0 + (params["b_ih_l0"] + params["b_hh_l0"])[None, None, :]
    g0 = jnp.pad(g0, ((0, 0), (0, 0), (0, g - four_h)))               # (S, Bp, G)

    # layer-0 recurrent weight (H, G)
    whh0 = jnp.pad(jnp.transpose(params["w_hh_l0"]),
                   ((0, 0), (0, g - four_h))).astype(jnp.bfloat16)
    # layer-1 fused weight [Wih1 ; Whh1] -> (2H, G)
    w1 = jnp.concatenate([jnp.transpose(params["w_ih_l1"]),
                          jnp.transpose(params["w_hh_l1"])], axis=0)
    w1 = jnp.pad(w1, ((0, 0), (0, g - four_h))).astype(jnp.bfloat16)
    # layer-1 bias, pre-broadcast (no per-iteration broadcast_in_dim in the kernel)
    b1 = jnp.pad(params["b_ih_l1"] + params["b_hh_l1"], (0, g - four_h))
    b1 = jnp.broadcast_to(b1[None, :], (bp, g)).astype(jnp.float32)

    fcw = jnp.pad(jnp.transpose(params["fc_w"]),
                  ((0, 0), (0, npad - NUM_CLASSES))).astype(jnp.bfloat16)   # (H, Np)
    fcb = jnp.pad(params["fc_b"], (0, npad - NUM_CLASSES))[None, :]         # (1, Np)

    # Explicit VMEM budget (resident weights single-buffered, g0 chunk double-buffered).
    est = ((h * g + 2 * h * g + h * npad) * 2          # bf16 weights
           + (bp * g + npad) * 4                        # biases
           + 2 * tchunk * bp * g * 4                    # g0 chunk, double-buffered
           + bp * npad * 4                              # resident output
           + 2 * 2 * bp * max(h, 128) * 4)              # h/c scratch (tile-padded bound)
    vmem_limit = int(min(max(4 * est, 32 * 1024 * 1024), 100 * 1024 * 1024))

    const2 = lambda s: (0, 0)   # resident operands: fetched once, kept in VMEM

    out = pl.pallas_call(
        lstm_fc_kernel,
        out_shape=jax.ShapeDtypeStruct((bp, npad), jnp.float32),
        grid_spec=pltpu.PrefetchScalarGridSpec(
            num_scalar_prefetch=0,
            grid=(seq // tchunk,),
            in_specs=[
                pl.BlockSpec((tchunk, bp, g), lambda s: (s, 0, 0)),   # g0 chunk (pipelined)
                pl.BlockSpec((h, g), const2, **_RESIDENT_KW),         # whh0
                pl.BlockSpec((2 * h, g), const2, **_RESIDENT_KW),     # w1
                pl.BlockSpec((bp, g), const2, **_RESIDENT_KW),        # b1
                pl.BlockSpec((h, npad), const2, **_RESIDENT_KW),      # fcw
                pl.BlockSpec((1, npad), const2, **_RESIDENT_KW),      # fcb
            ],
            out_specs=pl.BlockSpec((bp, npad), const2),
            scratch_shapes=[pltpu.VMEM((2, bp, h), jnp.bfloat16),     # h (layers 0,1)
                            pltpu.VMEM((2, bp, h), jnp.float32)]),    # c (layers 0,1)
        compiler_params=pltpu.CompilerParams(
            dimension_semantics=("arbitrary",),      # recurrence -> sequential grid
            vmem_limit_bytes=vmem_limit),
    )(g0, whh0, w1, b1, fcw, fcb)

    return out[:b, :NUM_CLASSES]


# ------------------------------ pure-JAX reference ---------------------------


@jax.jit
def lstm_ver1_reference(params, x):
    """Matched-precision (bf16 matmul operands, f32 accumulation) JAX reference."""
    b, seq, _ = x.shape
    h = params["w_hh_l0"].shape[1]

    def dot16(a, w):
        return jnp.dot(a.astype(jnp.bfloat16), w.astype(jnp.bfloat16),
                       preferred_element_type=jnp.float32)

    def run_layer(inp, wih, whh, bih, bhh):
        h_t = jnp.zeros((b, h), jnp.float32)
        c_t = jnp.zeros((b, h), jnp.float32)
        outs = []
        for s in range(seq):
            gates = dot16(inp[:, s, :], wih.T) + dot16(h_t, whh.T) + bih + bhh
            i, f, g, o = jnp.split(gates, 4, axis=1)
            i, f, o = jax.nn.sigmoid(i), jax.nn.sigmoid(f), jax.nn.sigmoid(o)
            g = jnp.tanh(g)
            c_t = f * c_t + i * g
            h_t = o * jnp.tanh(c_t)
            outs.append(h_t)
        return jnp.stack(outs, axis=1), h_t

    out0, _ = run_layer(x, params["w_ih_l0"], params["w_hh_l0"],
                        params["b_ih_l0"], params["b_hh_l0"])
    _, h1 = run_layer(out0, params["w_ih_l1"], params["w_hh_l1"],
                      params["b_ih_l1"], params["b_hh_l1"])
    return dot16(h1, params["fc_w"].T) + params["fc_b"]


# --------------------------------- init / main --------------------------------


def init_params(input_size, hidden_size, key):
    """PyTorch-style init: LSTM params ~ U(-1/sqrt(H), 1/sqrt(H)); Linear fan-in bound."""
    k = 1.0 / np.sqrt(hidden_size)
    keys = jax.random.split(key, 12)
    u = lambda kk, shape, bound: jax.random.uniform(kk, shape, jnp.float32, -bound, bound)
    return {
        "w_ih_l0": u(keys[0], (4 * hidden_size, input_size), k),
        "w_hh_l0": u(keys[1], (4 * hidden_size, hidden_size), k),
        "b_ih_l0": u(keys[2], (4 * hidden_size,), k),
        "b_hh_l0": u(keys[3], (4 * hidden_size,), k),
        "w_ih_l1": u(keys[4], (4 * hidden_size, hidden_size), k),
        "w_hh_l1": u(keys[5], (4 * hidden_size, hidden_size), k),
        "b_ih_l1": u(keys[6], (4 * hidden_size,), k),
        "b_hh_l1": u(keys[7], (4 * hidden_size,), k),
        "fc_w": u(keys[8], (NUM_CLASSES, hidden_size), k),
        "fc_b": u(keys[9], (NUM_CLASSES,), k),
    }


if __name__ == "__main__":
    batch, seq, input_size, hidden_size = 2, 8, 16, 32
    # num_layers = 2 (forward indexes hidden_n[0][1], so >= 2 layers are required;
    # layers above index 1 cannot affect the returned value).

    key = jax.random.PRNGKey(0)
    pkey, xkey = jax.random.split(key)
    params = init_params(input_size, hidden_size, pkey)
    x = jax.random.normal(xkey, (batch, seq, input_size), jnp.float32)

    out = jax.block_until_ready(lstm_ver1_forward(params, x))
    assert out.shape == (batch, NUM_CLASSES), f"got {out.shape}"
    assert bool(jnp.all(jnp.isfinite(out)))

    ref = jax.block_until_ready(lstm_ver1_reference(params, x))
    np.testing.assert_allclose(np.asarray(out), np.asarray(ref), rtol=2e-2, atol=2e-2)

    print("KERNEL_OK")
</pallas_src>

<mosaic_0001>
module attributes {stable_mosaic.version = 11 : i64} {
  func.func @lstm_fc_kernel(%arg0: i32, %arg1: memref<8x16x128xf32, #tpu.memory_space<vmem>>, %arg2: memref<32x128xbf16, #tpu.memory_space<vmem>>, %arg3: memref<64x128xbf16, #tpu.memory_space<vmem>>, %arg4: memref<16x128xf32, #tpu.memory_space<vmem>>, %arg5: memref<32x128xbf16, #tpu.memory_space<vmem>>, %arg6: memref<1x128xf32, #tpu.memory_space<vmem>>, %arg7: memref<16x128xf32, #tpu.memory_space<vmem>>, %arg8: memref<2x16x32xbf16, #tpu.memory_space<vmem>>, %arg9: memref<2x16x32xf32, #tpu.memory_space<vmem>>) attributes {dimension_semantics = [#tpu.dimension_semantics<arbitrary>], iteration_bounds = array<i64: 1>, scalar_prefetch = 0 : i64, scratch_operands = 2 : i64, tpu.core_type = #tpu.core_type<tc>, window_params = [{transform_indices = @transform_0, window_bounds = array<i64: 8, 16, 128>}, {pipeline_mode = #tpu.pipeline_mode<synchronous>, transform_indices = @transform_1, window_bounds = array<i64: 32, 128>}, {pipeline_mode = #tpu.pipeline_mode<synchronous>, transform_indices = @transform_2, window_bounds = array<i64: 64, 128>}, {pipeline_mode = #tpu.pipeline_mode<synchronous>, transform_indices = @transform_3, window_bounds = array<i64: 16, 128>}, {pipeline_mode = #tpu.pipeline_mode<synchronous>, transform_indices = @transform_4, window_bounds = array<i64: 32, 128>}, {pipeline_mode = #tpu.pipeline_mode<synchronous>, transform_indices = @transform_5, window_bounds = array<i64: 1, 128>}, {pipeline_mode = #tpu.pipeline_mode<synchronous>, transform_indices = @transform_6, window_bounds = array<i64: 16, 128>}]} {
    %c0_i32 = arith.constant 0 : i32
    %0 = arith.cmpi eq, %arg0, %c0_i32 : i32
    %1 = arith.extui %0 : i1 to i32
    %c0_i32_0 = arith.constant 0 : i32
    %2 = arith.cmpi ne, %1, %c0_i32_0 : i32
    scf.if %2 {
      %cst_207 = arith.constant 0.000000e+00 : bf16
      %605 = vector.broadcast %cst_207 : bf16 to vector<2x16x32xbf16>
      %c0_208 = arith.constant 0 : index
      %c0_209 = arith.constant 0 : index
      %c0_210 = arith.constant 0 : index
      %606 = vector.load %arg8[%c0_208, %c0_209, %c0_210] : memref<2x16x32xbf16, #tpu.memory_space<vmem>>, vector<2x16x32xbf16>
      tpu.vector_store %arg8[%c0_208, %c0_209, %c0_210], %605 {strides = array<i32>} : memref<2x16x32xbf16, #tpu.memory_space<vmem>>, vector<2x16x32xbf16>,
      %cst_211 = arith.constant 0.000000e+00 : f32
      %607 = vector.broadcast %cst_211 : f32 to vector<2x16x32xf32>
      %c0_212 = arith.constant 0 : index
      %c0_213 = arith.constant 0 : index
      %c0_214 = arith.constant 0 : index
      %608 = vector.load %arg9[%c0_212, %c0_213, %c0_214] : memref<2x16x32xf32, #tpu.memory_space<vmem>>, vector<2x16x32xf32>
      tpu.vector_store %arg9[%c0_212, %c0_213, %c0_214], %607 {strides = array<i32>} : memref<2x16x32xf32, #tpu.memory_space<vmem>>, vector<2x16x32xf32>,
    } else {
    }
    %c0 = arith.constant 0 : index
    %c0_1 = arith.constant 0 : index
    %3 = vector.load %arg2[%c0, %c0_1] : memref<32x128xbf16, #tpu.memory_space<vmem>>, vector<32x128xbf16>
    %c0_2 = arith.constant 0 : index
    %c0_3 = arith.constant 0 : index
    %4 = vector.load %arg3[%c0_2, %c0_3] : memref<64x128xbf16, #tpu.memory_space<vmem>>, vector<64x128xbf16>
    %c0_4 = arith.constant 0 : index
    %c0_5 = arith.constant 0 : index
    %5 = vector.load %arg4[%c0_4, %c0_5] : memref<16x128xf32, #tpu.memory_space<vmem>>, vector<16x128xf32>
    %c0_6 = arith.constant 0 : index
    %c0_7 = arith.constant 0 : index
    %c0_8 = arith.constant 0 : index
    %6 = vector.load %arg8[%c0_6, %c0_7, %c0_8] : memref<2x16x32xbf16, #tpu.memory_space<vmem>>, vector<1x16x32xbf16>
    %7 = vector.shape_cast %6 : vector<1x16x32xbf16> to vector<16x32xbf16>
    %c0_9 = arith.constant 0 : index
    %c0_10 = arith.constant 0 : index
    %c0_11 = arith.constant 0 : index
    %8 = vector.load %arg9[%c0_9, %c0_10, %c0_11] : memref<2x16x32xf32, #tpu.memory_space<vmem>>, vector<1x16x32xf32>
    %9 = vector.shape_cast %8 : vector<1x16x32xf32> to vector<16x32xf32>
    %c1 = arith.constant 1 : index
    %c0_12 = arith.constant 0 : index
    %c0_13 = arith.constant 0 : index
    %10 = vector.load %arg8[%c1, %c0_12, %c0_13] : memref<2x16x32xbf16, #tpu.memory_space<vmem>>, vector<1x16x32xbf16>
    %11 = vector.shape_cast %10 : vector<1x16x32xbf16> to vector<16x32xbf16>
    %c1_14 = arith.constant 1 : index
    %c0_15 = arith.constant 0 : index
    %c0_16 = arith.constant 0 : index
    %12 = vector.load %arg9[%c1_14, %c0_15, %c0_16] : memref<2x16x32xf32, #tpu.memory_space<vmem>>, vector<1x16x32xf32>
    %13 = vector.shape_cast %12 : vector<1x16x32xf32> to vector<16x32xf32>
    %c0_i32_17 = arith.constant 0 : i32
    %14 = arith.index_cast %c0_i32_17 : i32 to index
    %c0_18 = arith.constant 0 : index
    %c0_19 = arith.constant 0 : index
    %15 = vector.load %arg1[%14, %c0_18, %c0_19] : memref<8x16x128xf32, #tpu.memory_space<vmem>>, vector<1x16x128xf32>
    %16 = vector.shape_cast %15 : vector<1x16x128xf32> to vector<16x128xf32>
    %cst = arith.constant dense<0.000000e+00> : vector<16x128xf32>
    %17 = tpu.matmul %7, %3, %cst {dimension_numbers = #tpu.dot_dimension_numbers<[1], [0], [0], [1], [0, 0, 1, 1], [], []>} : vector<16x32xbf16>, vector<32x128xbf16>, vector<16x128xf32> -> vector<16x128xf32>
    %18 = arith.addf %16, %17 : vector<16x128xf32>
    %19 = vector.extract_strided_slice %18 {offsets = [0, 0], sizes = [16, 32], strides = [1, 1]} : vector<16x128xf32> to vector<16x32xf32>
    %cst_20 = arith.constant 5.000000e-01 : f32
    %20 = vector.broadcast %cst_20 : f32 to vector<16x32xf32>
    %21 = arith.mulf %20, %19 : vector<16x32xf32>
    %22 = math.tanh %21 : vector<16x32xf32>
    %cst_21 = arith.constant 5.000000e-01 : f32
    %23 = vector.broadcast %cst_21 : f32 to vector<16x32xf32>
    %24 = arith.mulf %23, %22 : vector<16x32xf32>
    %cst_22 = arith.constant 5.000000e-01 : f32
    %25 = vector.broadcast %cst_22 : f32 to vector<16x32xf32>
    %26 = arith.addf %24, %25 : vector<16x32xf32>
    %27 = vector.extract_strided_slice %18 {offsets = [0, 32], sizes = [16, 32], strides = [1, 1]} : vector<16x128xf32> to vector<16x32xf32>
    %cst_23 = arith.constant 5.000000e-01 : f32
    %28 = vector.broadcast %cst_23 : f32 to vector<16x32xf32>
    %29 = arith.mulf %28, %27 : vector<16x32xf32>
    %30 = math.tanh %29 : vector<16x32xf32>
    %cst_24 = arith.constant 5.000000e-01 : f32
    %31 = vector.broadcast %cst_24 : f32 to vector<16x32xf32>
    %32 = arith.mulf %31, %30 : vector<16x32xf32>
    %cst_25 = arith.constant 5.000000e-01 : f32
    %33 = vector.broadcast %cst_25 : f32 to vector<16x32xf32>
    %34 = arith.addf %32, %33 : vector<16x32xf32>
    %35 = vector.extract_strided_slice %18 {offsets = [0, 64], sizes = [16, 32], strides = [1, 1]} : vector<16x128xf32> to vector<16x32xf32>
    %36 = math.tanh %35 : vector<16x32xf32>
    %37 = vector.extract_strided_slice %18 {offsets = [0, 96], sizes = [16, 32], strides = [1, 1]} : vector<16x128xf32> to vector<16x32xf32>
    %cst_26 = arith.constant 5.000000e-01 : f32
    %38 = vector.broadcast %cst_26 : f32 to vector<16x32xf32>
    %39 = arith.mulf %38, %37 : vector<16x32xf32>
    %40 = math.tanh %39 : vector<16x32xf32>
    %cst_27 = arith.constant 5.000000e-01 : f32
    %41 = vector.broadcast %cst_27 : f32 to vector<16x32xf32>
    %42 = arith.mulf %41, %40 : vector<16x32xf32>
    %cst_28 = arith.constant 5.000000e-01 : f32
    %43 = vector.broadcast %cst_28 : f32 to vector<16x32xf32>
    %44 = arith.addf %42, %43 : vector<16x32xf32>
    %45 = arith.mulf %34, %9 : vector<16x32xf32>
    %46 = arith.mulf %26, %36 : vector<16x32xf32>
    %47 = arith.addf %45, %46 : vector<16x32xf32>
    %48 = math.tanh %47 : vector<16x32xf32>
    %49 = arith.mulf %44, %48 : vector<16x32xf32>
    %50 = arith.truncf %49 : vector<16x32xf32> to vector<16x32xbf16>
    %51 = tpu.concatenate %50, %11 in 1 : vector<16x32xbf16>, vector<16x32xbf16> -> vector<16x64xbf16>
    %cst_29 = arith.constant dense<0.000000e+00> : vector<16x128xf32>
    %52 = tpu.matmul %51, %4, %cst_29 {dimension_numbers = #tpu.dot_dimension_numbers<[1], [0], [0], [1], [0, 0, 1, 1], [], []>} : vector<16x64xbf16>, vector<64x128xbf16>, vector<16x128xf32> -> vector<16x128xf32>
    %53 = arith.addf %52, %5 : vector<16x128xf32>
    %54 = vector.extract_strided_slice %53 {offsets = [0, 0], sizes = [16, 32], strides = [1, 1]} : vector<16x128xf32> to vector<16x32xf32>
    %cst_30 = arith.constant 5.000000e-01 : f32
    %55 = vector.broadcast %cst_30 : f32 to vector<16x32xf32>
    %56 = arith.mulf %55, %54 : vector<16x32xf32>
    %57 = math.tanh %56 : vector<16x32xf32>
    %cst_31 = arith.constant 5.000000e-01 : f32
    %58 = vector.broadcast %cst_31 : f32 to vector<16x32xf32>
    %59 = arith.mulf %58, %57 : vector<16x32xf32>
    %cst_32 = arith.constant 5.000000e-01 : f32
    %60 = vector.broadcast %cst_32 : f32 to vector<16x32xf32>
    %61 = arith.addf %59, %60 : vector<16x32xf32>
    %62 = vector.extract_strided_slice %53 {offsets = [0, 32], sizes = [16, 32], strides = [1, 1]} : vector<16x128xf32> to vector<16x32xf32>
    %cst_33 = arith.constant 5.000000e-01 : f32
    %63 = vector.broadcast %cst_33 : f32 to vector<16x32xf32>
    %64 = arith.mulf %63, %62 : vector<16x32xf32>
    %65 = math.tanh %64 : vector<16x32xf32>
    %cst_34 = arith.constant 5.000000e-01 : f32
    %66 = vector.broadcast %cst_34 : f32 to vector<16x32xf32>
    %67 = arith.mulf %66, %65 : vector<16x32xf32>
    %cst_35 = arith.constant 5.000000e-01 : f32
    %68 = vector.broadcast %cst_35 : f32 to vector<16x32xf32>
    %69 = arith.addf %67, %68 : vector<16x32xf32>
    %70 = vector.extract_strided_slice %53 {offsets = [0, 64], sizes = [16, 32], strides = [1, 1]} : vector<16x128xf32> to vector<16x32xf32>
    %71 = math.tanh %70 : vector<16x32xf32>
    %72 = vector.extract_strided_slice %53 {offsets = [0, 96], sizes = [16, 32], strides = [1, 1]} : vector<16x128xf32> to vector<16x32xf32>
    %cst_36 = arith.constant 5.000000e-01 : f32
    %73 = vector.broadcast %cst_36 : f32 to vector<16x32xf32>
    %74 = arith.mulf %73, %72 : vector<16x32xf32>
    %75 = math.tanh %74 : vector<16x32xf32>
    %cst_37 = arith.constant 5.000000e-01 : f32
    %76 = vector.broadcast %cst_37 : f32 to vector<16x32xf32>
    %77 = arith.mulf %76, %75 : vector<16x32xf32>
    %cst_38 = arith.constant 5.000000e-01 : f32
    %78 = vector.broadcast %cst_38 : f32 to vector<16x32xf32>
    %79 = arith.addf %77, %78 : vector<16x32xf32>
    %80 = arith.mulf %69, %13 : vector<16x32xf32>
    %81 = arith.mulf %61, %71 : vector<16x32xf32>
    %82 = arith.addf %80, %81 : vector<16x32xf32>
    %83 = math.tanh %82 : vector<16x32xf32>
    %84 = arith.mulf %79, %83 : vector<16x32xf32>
    %85 = arith.truncf %84 : vector<16x32xf32> to vector<16x32xbf16>
    %c1_i32 = arith.constant 1 : i32
    %86 = arith.index_cast %c1_i32 : i32 to index
    %c0_39 = arith.constant 0 : index
    %c0_40 = arith.constant 0 : index
    %87 = vector.load %arg1[%86, %c0_39, %c0_40] : memref<8x16x128xf32, #tpu.memory_space<vmem>>, vector<1x16x128xf32>
    %88 = vector.shape_cast %87 : vector<1x16x128xf32> to vector<16x128xf32>
    %cst_41 = arith.constant dense<0.000000e+00> : vector<16x128xf32>
    %89 = tpu.matmul %50, %3, %cst_41 {dimension_numbers = #tpu.dot_dimension_numbers<[1], [0], [0], [1], [0, 0, 1, 1], [], []>} : vector<16x32xbf16>, vector<32x128xbf16>, vector<16x128xf32> -> vector<16x128xf32>
    %90 = arith.addf %88, %89 : vector<16x128xf32>
    %91 = vector.extract_strided_slice %90 {offsets = [0, 0], sizes = [16, 32], strides = [1, 1]} : vector<16x128xf32> to vector<16x32xf32>
    %cst_42 = arith.constant 5.000000e-01 : f32
    %92 = vector.broadcast %cst_42 : f32 to vector<16x32xf32>
    %93 = arith.mulf %92, %91 : vector<16x32xf32>
    %94 = math.tanh %93 : vector<16x32xf32>
    %cst_43 = arith.constant 5.000000e-01 : f32
    %95 = vector.broadcast %cst_43 : f32 to vector<16x32xf32>
    %96 = arith.mulf %95, %94 : vector<16x32xf32>
    %cst_44 = arith.constant 5.000000e-01 : f32
    %97 = vector.broadcast %cst_44 : f32 to vector<16x32xf32>
    %98 = arith.addf %96, %97 : vector<16x32xf32>
    %99 = vector.extract_strided_slice %90 {offsets = [0, 32], sizes = [16, 32], strides = [1, 1]} : vector<16x128xf32> to vector<16x32xf32>
    %cst_45 = arith.constant 5.000000e-01 : f32
    %100 = vector.broadcast %cst_45 : f32 to vector<16x32xf32>
    %101 = arith.mulf %100, %99 : vector<16x32xf32>
    %102 = math.tanh %101 : vector<16x32xf32>
    %cst_46 = arith.constant 5.000000e-01 : f32
    %103 = vector.broadcast %cst_46 : f32 to vector<16x32xf32>
    %104 = arith.mulf %103, %102 : vector<16x32xf32>
    %cst_47 = arith.constant 5.000000e-01 : f32
    %105 = vector.broadcast %cst_47 : f32 to vector<16x32xf32>
    %106 = arith.addf %104, %105 : vector<16x32xf32>
    %107 = vector.extract_strided_slice %90 {offsets = [0, 64], sizes = [16, 32], strides = [1, 1]} : vector<16x128xf32> to vector<16x32xf32>
    %108 = math.tanh %107 : vector<16x32xf32>
    %109 = vector.extract_strided_slice %90 {offsets = [0, 96], sizes = [16, 32], strides = [1, 1]} : vector<16x128xf32> to vector<16x32xf32>
    %cst_48 = arith.constant 5.000000e-01 : f32
    %110 = vector.broadcast %cst_48 : f32 to vector<16x32xf32>
    %111 = arith.mulf %110, %109 : vector<16x32xf32>
    %112 = math.tanh %111 : vector<16x32xf32>
    %cst_49 = arith.constant 5.000000e-01 : f32
    %113 = vector.broadcast %cst_49 : f32 to vector<16x32xf32>
    %114 = arith.mulf %113, %112 : vector<16x32xf32>
    %cst_50 = arith.constant 5.000000e-01 : f32
    %115 = vector.broadcast %cst_50 : f32 to vector<16x32xf32>
    %116 = arith.addf %114, %115 : vector<16x32xf32>
    %117 = arith.mulf %106, %47 : vector<16x32xf32>
    %118 = arith.mulf %98, %108 : vector<16x32xf32>
    %119 = arith.addf %117, %118 : vector<16x32xf32>
    %120 = math.tanh %119 : vector<16x32xf32>
    %121 = arith.mulf %116, %120 : vector<16x32xf32>
    %122 = arith.truncf %121 : vector<16x32xf32> to vector<16x32xbf16>
    %123 = tpu.concatenate %122, %85 in 1 : vector<16x32xbf16>, vector<16x32xbf16> -> vector<16x64xbf16>
    %cst_51 = arith.constant dense<0.000000e+00> : vector<16x128xf32>
    %124 = tpu.matmul %123, %4, %cst_51 {dimension_numbers = #tpu.dot_dimension_numbers<[1], [0], [0], [1], [0, 0, 1, 1], [], []>} : vector<16x64xbf16>, vector<64x128xbf16>, vector<16x128xf32> -> vector<16x128xf32>
    %125 = arith.addf %124, %5 : vector<16x128xf32>
    %126 = vector.extract_strided_slice %125 {offsets = [0, 0], sizes = [16, 32], strides = [1, 1]} : vector<16x128xf32> to vector<16x32xf32>
    %cst_52 = arith.constant 5.000000e-01 : f32
    %127 = vector.broadcast %cst_52 : f32 to vector<16x32xf32>
    %128 = arith.mulf %127, %126 : vector<16x32xf32>
    %129 = math.tanh %128 : vector<16x32xf32>
    %cst_53 = arith.constant 5.000000e-01 : f32
    %130 = vector.broadcast %cst_53 : f32 to vector<16x32xf32>
    %131 = arith.mulf %130, %129 : vector<16x32xf32>
    %cst_54 = arith.constant 5.000000e-01 : f32
    %132 = vector.broadcast %cst_54 : f32 to vector<16x32xf32>
    %133 = arith.addf %131, %132 : vector<16x32xf32>
    %134 = vector.extract_strided_slice %125 {offsets = [0, 32], sizes = [16, 32], strides = [1, 1]} : vector<16x128xf32> to vector<16x32xf32>
    %cst_55 = arith.constant 5.000000e-01 : f32
    %135 = vector.broadcast %cst_55 : f32 to vector<16x32xf32>
    %136 = arith.mulf %135, %134 : vector<16x32xf32>
    %137 = math.tanh %136 : vector<16x32xf32>
    %cst_56 = arith.constant 5.000000e-01 : f32
    %138 = vector.broadcast %cst_56 : f32 to vector<16x32xf32>
    %139 = arith.mulf %138, %137 : vector<16x32xf32>
    %cst_57 = arith.constant 5.000000e-01 : f32
    %140 = vector.broadcast %cst_57 : f32 to vector<16x32xf32>
    %141 = arith.addf %139, %140 : vector<16x32xf32>
    %142 = vector.extract_strided_slice %125 {offsets = [0, 64], sizes = [16, 32], strides = [1, 1]} : vector<16x128xf32> to vector<16x32xf32>
    %143 = math.tanh %142 : vector<16x32xf32>
    %144 = vector.extract_strided_slice %125 {offsets = [0, 96], sizes = [16, 32], strides = [1, 1]} : vector<16x128xf32> to vector<16x32xf32>
    %cst_58 = arith.constant 5.000000e-01 : f32
    %145 = vector.broadcast %cst_58 : f32 to vector<16x32xf32>
    %146 = arith.mulf %145, %144 : vector<16x32xf32>
    %147 = math.tanh %146 : vector<16x32xf32>
    %cst_59 = arith.constant 5.000000e-01 : f32
    %148 = vector.broadcast %cst_59 : f32 to vector<16x32xf32>
    %149 = arith.mulf %148, %147 : vector<16x32xf32>
    %cst_60 = arith.constant 5.000000e-01 : f32
    %150 = vector.broadcast %cst_60 : f32 to vector<16x32xf32>
    %151 = arith.addf %149, %150 : vector<16x32xf32>
    %152 = arith.mulf %141, %82 : vector<16x32xf32>
    %153 = arith.mulf %133, %143 : vector<16x32xf32>
    %154 = arith.addf %152, %153 : vector<16x32xf32>
    %155 = math.tanh %154 : vector<16x32xf32>
    %156 = arith.mulf %151, %155 : vector<16x32xf32>
    %157 = arith.truncf %156 : vector<16x32xf32> to vector<16x32xbf16>
    %c2_i32 = arith.constant 2 : i32
    %158 = arith.index_cast %c2_i32 : i32 to index
    %c0_61 = arith.constant 0 : index
    %c0_62 = arith.constant 0 : index
    %159 = vector.load %arg1[%158, %c0_61, %c0_62] : memref<8x16x128xf32, #tpu.memory_space<vmem>>, vector<1x16x128xf32>
    %160 = vector.shape_cast %159 : vector<1x16x128xf32> to vector<16x128xf32>
    %cst_63 = arith.constant dense<0.000000e+00> : vector<16x128xf32>
    %161 = tpu.matmul %122, %3, %cst_63 {dimension_numbers = #tpu.dot_dimension_numbers<[1], [0], [0], [1], [0, 0, 1, 1], [], []>} : vector<16x32xbf16>, vector<32x128xbf16>, vector<16x128xf32> -> vector<16x128xf32>
    %162 = arith.addf %160, %161 : vector<16x128xf32>
    %163 = vector.extract_strided_slice %162 {offsets = [0, 0], sizes = [16, 32], strides = [1, 1]} : vector<16x128xf32> to vector<16x32xf32>
    %cst_64 = arith.constant 5.000000e-01 : f32
    %164 = vector.broadcast %cst_64 : f32 to vector<16x32xf32>
    %165 = arith.mulf %164, %163 : vector<16x32xf32>
    %166 = math.tanh %165 : vector<16x32xf32>
    %cst_65 = arith.constant 5.000000e-01 : f32
    %167 = vector.broadcast %cst_65 : f32 to vector<16x32xf32>
    %168 = arith.mulf %167, %166 : vector<16x32xf32>
    %cst_66 = arith.constant 5.000000e-01 : f32
    %169 = vector.broadcast %cst_66 : f32 to vector<16x32xf32>
    %170 = arith.addf %168, %169 : vector<16x32xf32>
    %171 = vector.extract_strided_slice %162 {offsets = [0, 32], sizes = [16, 32], strides = [1, 1]} : vector<16x128xf32> to vector<16x32xf32>
    %cst_67 = arith.constant 5.000000e-01 : f32
    %172 = vector.broadcast %cst_67 : f32 to vector<16x32xf32>
    %173 = arith.mulf %172, %171 : vector<16x32xf32>
    %174 = math.tanh %173 : vector<16x32xf32>
    %cst_68 = arith.constant 5.000000e-01 : f32
    %175 = vector.broadcast %cst_68 : f32 to vector<16x32xf32>
    %176 = arith.mulf %175, %174 : vector<16x32xf32>
    %cst_69 = arith.constant 5.000000e-01 : f32
    %177 = vector.broadcast %cst_69 : f32 to vector<16x32xf32>
    %178 = arith.addf %176, %177 : vector<16x32xf32>
    %179 = vector.extract_strided_slice %162 {offsets = [0, 64], sizes = [16, 32], strides = [1, 1]} : vector<16x128xf32> to vector<16x32xf32>
    %180 = math.tanh %179 : vector<16x32xf32>
    %181 = vector.extract_strided_slice %162 {offsets = [0, 96], sizes = [16, 32], strides = [1, 1]} : vector<16x128xf32> to vector<16x32xf32>
    %cst_70 = arith.constant 5.000000e-01 : f32
    %182 = vector.broadcast %cst_70 : f32 to vector<16x32xf32>
    %183 = arith.mulf %182, %181 : vector<16x32xf32>
    %184 = math.tanh %183 : vector<16x32xf32>
    %cst_71 = arith.constant 5.000000e-01 : f32
    %185 = vector.broadcast %cst_71 : f32 to vector<16x32xf32>
    %186 = arith.mulf %185, %184 : vector<16x32xf32>
    %cst_72 = arith.constant 5.000000e-01 : f32
    %187 = vector.broadcast %cst_72 : f32 to vector<16x32xf32>
    %188 = arith.addf %186, %187 : vector<16x32xf32>
    %189 = arith.mulf %178, %119 : vector<16x32xf32>
    %190 = arith.mulf %170, %180 : vector<16x32xf32>
    %191 = arith.addf %189, %190 : vector<16x32xf32>
    %192 = math.tanh %191 : vector<16x32xf32>
    %193 = arith.mulf %188, %192 : vector<16x32xf32>
    %194 = arith.truncf %193 : vector<16x32xf32> to vector<16x32xbf16>
    %195 = tpu.concatenate %194, %157 in 1 : vector<16x32xbf16>, vector<16x32xbf16> -> vector<16x64xbf16>
    %cst_73 = arith.constant dense<0.000000e+00> : vector<16x128xf32>
    %196 = tpu.matmul %195, %4, %cst_73 {dimension_numbers = #tpu.dot_dimension_numbers<[1], [0], [0], [1], [0, 0, 1, 1], [], []>} : vector<16x64xbf16>, vector<64x128xbf16>, vector<16x128xf32> -> vector<16x128xf32>
    %197 = arith.addf %196, %5 : vector<16x128xf32>
    %198 = vector.extract_strided_slice %197 {offsets = [0, 0], sizes = [16, 32], strides = [1, 1]} : vector<16x128xf32> to vector<16x32xf32>
    %cst_74 = arith.constant 5.000000e-01 : f32
    %199 = vector.broadcast %cst_74 : f32 to vector<16x32xf32>
    %200 = arith.mulf %199, %198 : vector<16x32xf32>
    %201 = math.tanh %200 : vector<16x32xf32>
    %cst_75 = arith.constant 5.000000e-01 : f32
    %202 = vector.broadcast %cst_75 : f32 to vector<16x32xf32>
    %203 = arith.mulf %202, %201 : vector<16x32xf32>
    %cst_76 = arith.constant 5.000000e-01 : f32
    %204 = vector.broadcast %cst_76 : f32 to vector<16x32xf32>
    %205 = arith.addf %203, %204 : vector<16x32xf32>
    %206 = vector.extract_strided_slice %197 {offsets = [0, 32], sizes = [16, 32], strides = [1, 1]} : vector<16x128xf32> to vector<16x32xf32>
    %cst_77 = arith.constant 5.000000e-01 : f32
    %207 = vector.broadcast %cst_77 : f32 to vector<16x32xf32>
    %208 = arith.mulf %207, %206 : vector<16x32xf32>
    %209 = math.tanh %208 : vector<16x32xf32>
    %cst_78 = arith.constant 5.000000e-01 : f32
    %210 = vector.broadcast %cst_78 : f32 to vector<16x32xf32>
    %211 = arith.mulf %210, %209 : vector<16x32xf32>
    %cst_79 = arith.constant 5.000000e-01 : f32
    %212 = vector.broadcast %cst_79 : f32 to vector<16x32xf32>
    %213 = arith.addf %211, %212 : vector<16x32xf32>
    %214 = vector.extract_strided_slice %197 {offsets = [0, 64], sizes = [16, 32], strides = [1, 1]} : vector<16x128xf32> to vector<16x32xf32>
    %215 = math.tanh %214 : vector<16x32xf32>
    %216 = vector.extract_strided_slice %197 {offsets = [0, 96], sizes = [16, 32], strides = [1, 1]} : vector<16x128xf32> to vector<16x32xf32>
    %cst_80 = arith.constant 5.000000e-01 : f32
    %217 = vector.broadcast %cst_80 : f32 to vector<16x32xf32>
    %218 = arith.mulf %217, %216 : vector<16x32xf32>
    %219 = math.tanh %218 : vector<16x32xf32>
    %cst_81 = arith.constant 5.000000e-01 : f32
    %220 = vector.broadcast %cst_81 : f32 to vector<16x32xf32>
    %221 = arith.mulf %220, %219 : vector<16x32xf32>
    %cst_82 = arith.constant 5.000000e-01 : f32
    %222 = vector.broadcast %cst_82 : f32 to vector<16x32xf32>
    %223 = arith.addf %221, %222 : vector<16x32xf32>
    %224 = arith.mulf %213, %154 : vector<16x32xf32>
    %225 = arith.mulf %205, %215 : vector<16x32xf32>
    %226 = arith.addf %224, %225 : vector<16x32xf32>
    %227 = math.tanh %226 : vector<16x32xf32>
    %228 = arith.mulf %223, %227 : vector<16x32xf32>
    %229 = arith.truncf %228 : vector<16x32xf32> to vector<16x32xbf16>
    %c3_i32 = arith.constant 3 : i32
    %230 = arith.index_cast %c3_i32 : i32 to index
    %c0_83 = arith.constant 0 : index
    %c0_84 = arith.constant 0 : index
    %231 = vector.load %arg1[%230, %c0_83, %c0_84] : memref<8x16x128xf32, #tpu.memory_space<vmem>>, vector<1x16x128xf32>
    %232 = vector.shape_cast %231 : vector<1x16x128xf32> to vector<16x128xf32>
    %cst_85 = arith.constant dense<0.000000e+00> : vector<16x128xf32>
    %233 = tpu.matmul %194, %3, %cst_85 {dimension_numbers = #tpu.dot_dimension_numbers<[1], [0], [0], [1], [0, 0, 1, 1], [], []>} : vector<16x32xbf16>, vector<32x128xbf16>, vector<16x128xf32> -> vector<16x128xf32>
    %234 = arith.addf %232, %233 : vector<16x128xf32>
    %235 = vector.extract_strided_slice %234 {offsets = [0, 0], sizes = [16, 32], strides = [1, 1]} : vector<16x128xf32> to vector<16x32xf32>
    %cst_86 = arith.constant 5.000000e-01 : f32
    %236 = vector.broadcast %cst_86 : f32 to vector<16x32xf32>
    %237 = arith.mulf %236, %235 : vector<16x32xf32>
    %238 = math.tanh %237 : vector<16x32xf32>
    %cst_87 = arith.constant 5.000000e-01 : f32
    %239 = vector.broadcast %cst_87 : f32 to vector<16x32xf32>
    %240 = arith.mulf %239, %238 : vector<16x32xf32>
    %cst_88 = arith.constant 5.000000e-01 : f32
    %241 = vector.broadcast %cst_88 : f32 to vector<16x32xf32>
    %242 = arith.addf %240, %241 : vector<16x32xf32>
    %243 = vector.extract_strided_slice %234 {offsets = [0, 32], sizes = [16, 32], strides = [1, 1]} : vector<16x128xf32> to vector<16x32xf32>
    %cst_89 = arith.constant 5.000000e-01 : f32
    %244 = vector.broadcast %cst_89 : f32 to vector<16x32xf32>
    %245 = arith.mulf %244, %243 : vector<16x32xf32>
    %246 = math.tanh %245 : vector<16x32xf32>
    %cst_90 = arith.constant 5.000000e-01 : f32
    %247 = vector.broadcast %cst_90 : f32 to vector<16x32xf32>
    %248 = arith.mulf %247, %246 : vector<16x32xf32>
    %cst_91 = arith.constant 5.000000e-01 : f32
    %249 = vector.broadcast %cst_91 : f32 to vector<16x32xf32>
    %250 = arith.addf %248, %249 : vector<16x32xf32>
    %251 = vector.extract_strided_slice %234 {offsets = [0, 64], sizes = [16, 32], strides = [1, 1]} : vector<16x128xf32> to vector<16x32xf32>
    %252 = math.tanh %251 : vector<16x32xf32>
    %253 = vector.extract_strided_slice %234 {offsets = [0, 96], sizes = [16, 32], strides = [1, 1]} : vector<16x128xf32> to vector<16x32xf32>
    %cst_92 = arith.constant 5.000000e-01 : f32
    %254 = vector.broadcast %cst_92 : f32 to vector<16x32xf32>
    %255 = arith.mulf %254, %253 : vector<16x32xf32>
    %256 = math.tanh %255 : vector<16x32xf32>
    %cst_93 = arith.constant 5.000000e-01 : f32
    %257 = vector.broadcast %cst_93 : f32 to vector<16x32xf32>
    %258 = arith.mulf %257, %256 : vector<16x32xf32>
    %cst_94 = arith.constant 5.000000e-01 : f32
    %259 = vector.broadcast %cst_94 : f32 to vector<16x32xf32>
    %260 = arith.addf %258, %259 : vector<16x32xf32>
    %261 = arith.mulf %250, %191 : vector<16x32xf32>
    %262 = arith.mulf %242, %252 : vector<16x32xf32>
    %263 = arith.addf %261, %262 : vector<16x32xf32>
    %264 = math.tanh %263 : vector<16x32xf32>
    %265 = arith.mulf %260, %264 : vector<16x32xf32>
    %266 = arith.truncf %265 : vector<16x32xf32> to vector<16x32xbf16>
    %267 = tpu.concatenate %266, %229 in 1 : vector<16x32xbf16>, vector<16x32xbf16> -> vector<16x64xbf16>
    %cst_95 = arith.constant dense<0.000000e+00> : vector<16x128xf32>
    %268 = tpu.matmul %267, %4, %cst_95 {dimension_numbers = #tpu.dot_dimension_numbers<[1], [0], [0], [1], [0, 0, 1, 1], [], []>} : vector<16x64xbf16>, vector<64x128xbf16>, vector<16x128xf32> -> vector<16x128xf32>
    %269 = arith.addf %268, %5 : vector<16x128xf32>
    %270 = vector.extract_strided_slice %269 {offsets = [0, 0], sizes = [16, 32], strides = [1, 1]} : vector<16x128xf32> to vector<16x32xf32>
    %cst_96 = arith.constant 5.000000e-01 : f32
    %271 = vector.broadcast %cst_96 : f32 to vector<16x32xf32>
    %272 = arith.mulf %271, %270 : vector<16x32xf32>
    %273 = math.tanh %272 : vector<16x32xf32>
    %cst_97 = arith.constant 5.000000e-01 : f32
    %274 = vector.broadcast %cst_97 : f32 to vector<16x32xf32>
    %275 = arith.mulf %274, %273 : vector<16x32xf32>
    %cst_98 = arith.constant 5.000000e-01 : f32
    %276 = vector.broadcast %cst_98 : f32 to vector<16x32xf32>
    %277 = arith.addf %275, %276 : vector<16x32xf32>
    %278 = vector.extract_strided_slice %269 {offsets = [0, 32], sizes = [16, 32], strides = [1, 1]} : vector<16x128xf32> to vector<16x32xf32>
    %cst_99 = arith.constant 5.000000e-01 : f32
    %279 = vector.broadcast %cst_99 : f32 to vector<16x32xf32>
    %280 = arith.mulf %279, %278 : vector<16x32xf32>
    %281 = math.tanh %280 : vector<16x32xf32>
    %cst_100 = arith.constant 5.000000e-01 : f32
    %282 = vector.broadcast %cst_100 : f32 to vector<16x32xf32>
    %283 = arith.mulf %282, %281 : vector<16x32xf32>
    %cst_101 = arith.constant 5.000000e-01 : f32
    %284 = vector.broadcast %cst_101 : f32 to vector<16x32xf32>
    %285 = arith.addf %283, %284 : vector<16x32xf32>
    %286 = vector.extract_strided_slice %269 {offsets = [0, 64], sizes = [16, 32], strides = [1, 1]} : vector<16x128xf32> to vector<16x32xf32>
    %287 = math.tanh %286 : vector<16x32xf32>
    %288 = vector.extract_strided_slice %269 {offsets = [0, 96], sizes = [16, 32], strides = [1, 1]} : vector<16x128xf32> to vector<16x32xf32>
    %cst_102 = arith.constant 5.000000e-01 : f32
    %289 = vector.broadcast %cst_102 : f32 to vector<16x32xf32>
    %290 = arith.mulf %289, %288 : vector<16x32xf32>
    %291 = math.tanh %290 : vector<16x32xf32>
    %cst_103 = arith.constant 5.000000e-01 : f32
    %292 = vector.broadcast %cst_103 : f32 to vector<16x32xf32>
    %293 = arith.mulf %292, %291 : vector<16x32xf32>
    %cst_104 = arith.constant 5.000000e-01 : f32
    %294 = vector.broadcast %cst_104 : f32 to vector<16x32xf32>
    %295 = arith.addf %293, %294 : vector<16x32xf32>
    %296 = arith.mulf %285, %226 : vector<16x32xf32>
    %297 = arith.mulf %277, %287 : vector<16x32xf32>
    %298 = arith.addf %296, %297 : vector<16x32xf32>
    %299 = math.tanh %298 : vector<16x32xf32>
    %300 = arith.mulf %295, %299 : vector<16x32xf32>
    %301 = arith.truncf %300 : vector<16x32xf32> to vector<16x32xbf16>
    %c4_i32 = arith.constant 4 : i32
    %302 = arith.index_cast %c4_i32 : i32 to index
    %c0_105 = arith.constant 0 : index
    %c0_106 = arith.constant 0 : index
    %303 = vector.load %arg1[%302, %c0_105, %c0_106] : memref<8x16x128xf32, #tpu.memory_space<vmem>>, vector<1x16x128xf32>
    %304 = vector.shape_cast %303 : vector<1x16x128xf32> to vector<16x128xf32>
    %cst_107 = arith.constant dense<0.000000e+00> : vector<16x128xf32>
    %305 = tpu.matmul %266, %3, %cst_107 {dimension_numbers = #tpu.dot_dimension_numbers<[1], [0], [0], [1], [0, 0, 1, 1], [], []>} : vector<16x32xbf16>, vector<32x128xbf16>, vector<16x128xf32> -> vector<16x128xf32>
    %306 = arith.addf %304, %305 : vector<16x128xf32>
    %307 = vector.extract_strided_slice %306 {offsets = [0, 0], sizes = [16, 32], strides = [1, 1]} : vector<16x128xf32> to vector<16x32xf32>
    %cst_108 = arith.constant 5.000000e-01 : f32
    %308 = vector.broadcast %cst_108 : f32 to vector<16x32xf32>
    %309 = arith.mulf %308, %307 : vector<16x32xf32>
    %310 = math.tanh %309 : vector<16x32xf32>
    %cst_109 = arith.constant 5.000000e-01 : f32
    %311 = vector.broadcast %cst_109 : f32 to vector<16x32xf32>
    %312 = arith.mulf %311, %310 : vector<16x32xf32>
    %cst_110 = arith.constant 5.000000e-01 : f32
    %313 = vector.broadcast %cst_110 : f32 to vector<16x32xf32>
    %314 = arith.addf %312, %313 : vector<16x32xf32>
    %315 = vector.extract_strided_slice %306 {offsets = [0, 32], sizes = [16, 32], strides = [1, 1]} : vector<16x128xf32> to vector<16x32xf32>
    %cst_111 = arith.constant 5.000000e-01 : f32
    %316 = vector.broadcast %cst_111 : f32 to vector<16x32xf32>
    %317 = arith.mulf %316, %315 : vector<16x32xf32>
    %318 = math.tanh %317 : vector<16x32xf32>
    %cst_112 = arith.constant 5.000000e-01 : f32
    %319 = vector.broadcast %cst_112 : f32 to vector<16x32xf32>
    %320 = arith.mulf %319, %318 : vector<16x32xf32>
    %cst_113 = arith.constant 5.000000e-01 : f32
    %321 = vector.broadcast %cst_113 : f32 to vector<16x32xf32>
    %322 = arith.addf %320, %321 : vector<16x32xf32>
    %323 = vector.extract_strided_slice %306 {offsets = [0, 64], sizes = [16, 32], strides = [1, 1]} : vector<16x128xf32> to vector<16x32xf32>
    %324 = math.tanh %323 : vector<16x32xf32>
    %325 = vector.extract_strided_slice %306 {offsets = [0, 96], sizes = [16, 32], strides = [1, 1]} : vector<16x128xf32> to vector<16x32xf32>
    %cst_114 = arith.constant 5.000000e-01 : f32
    %326 = vector.broadcast %cst_114 : f32 to vector<16x32xf32>
    %327 = arith.mulf %326, %325 : vector<16x32xf32>
    %328 = math.tanh %327 : vector<16x32xf32>
    %cst_115 = arith.constant 5.000000e-01 : f32
    %329 = vector.broadcast %cst_115 : f32 to vector<16x32xf32>
    %330 = arith.mulf %329, %328 : vector<16x32xf32>
    %cst_116 = arith.constant 5.000000e-01 : f32
    %331 = vector.broadcast %cst_116 : f32 to vector<16x32xf32>
    %332 = arith.addf %330, %331 : vector<16x32xf32>
    %333 = arith.mulf %322, %263 : vector<16x32xf32>
    %334 = arith.mulf %314, %324 : vector<16x32xf32>
    %335 = arith.addf %333, %334 : vector<16x32xf32>
    %336 = math.tanh %335 : vector<16x32xf32>
    %337 = arith.mulf %332, %336 : vector<16x32xf32>
    %338 = arith.truncf %337 : vector<16x32xf32> to vector<16x32xbf16>
    %339 = tpu.concatenate %338, %301 in 1 : vector<16x32xbf16>, vector<16x32xbf16> -> vector<16x64xbf16>
    %cst_117 = arith.constant dense<0.000000e+00> : vector<16x128xf32>
    %340 = tpu.matmul %339, %4, %cst_117 {dimension_numbers = #tpu.dot_dimension_numbers<[1], [0], [0], [1], [0, 0, 1, 1], [], []>} : vector<16x64xbf16>, vector<64x128xbf16>, vector<16x128xf32> -> vector<16x128xf32>
    %341 = arith.addf %340, %5 : vector<16x128xf32>
    %342 = vector.extract_strided_slice %341 {offsets = [0, 0], sizes = [16, 32], strides = [1, 1]} : vector<16x128xf32> to vector<16x32xf32>
    %cst_118 = arith.constant 5.000000e-01 : f32
    %343 = vector.broadcast %cst_118 : f32 to vector<16x32xf32>
    %344 = arith.mulf %343, %342 : vector<16x32xf32>
    %345 = math.tanh %344 : vector<16x32xf32>
    %cst_119 = arith.constant 5.000000e-01 : f32
    %346 = vector.broadcast %cst_119 : f32 to vector<16x32xf32>
    %347 = arith.mulf %346, %345 : vector<16x32xf32>
    %cst_120 = arith.constant 5.000000e-01 : f32
    %348 = vector.broadcast %cst_120 : f32 to vector<16x32xf32>
    %349 = arith.addf %347, %348 : vector<16x32xf32>
    %350 = vector.extract_strided_slice %341 {offsets = [0, 32], sizes = [16, 32], strides = [1, 1]} : vector<16x128xf32> to vector<16x32xf32>
    %cst_121 = arith.constant 5.000000e-01 : f32
    %351 = vector.broadcast %cst_121 : f32 to vector<16x32xf32>
    %352 = arith.mulf %351, %350 : vector<16x32xf32>
    %353 = math.tanh %352 : vector<16x32xf32>
    %cst_122 = arith.constant 5.000000e-01 : f32
    %354 = vector.broadcast %cst_122 : f32 to vector<16x32xf32>
    %355 = arith.mulf %354, %353 : vector<16x32xf32>
    %cst_123 = arith.constant 5.000000e-01 : f32
    %356 = vector.broadcast %cst_123 : f32 to vector<16x32xf32>
    %357 = arith.addf %355, %356 : vector<16x32xf32>
    %358 = vector.extract_strided_slice %341 {offsets = [0, 64], sizes = [16, 32], strides = [1, 1]} : vector<16x128xf32> to vector<16x32xf32>
    %359 = math.tanh %358 : vector<16x32xf32>
    %360 = vector.extract_strided_slice %341 {offsets = [0, 96], sizes = [16, 32], strides = [1, 1]} : vector<16x128xf32> to vector<16x32xf32>
    %cst_124 = arith.constant 5.000000e-01 : f32
    %361 = vector.broadcast %cst_124 : f32 to vector<16x32xf32>
    %362 = arith.mulf %361, %360 : vector<16x32xf32>
    %363 = math.tanh %362 : vector<16x32xf32>
    %cst_125 = arith.constant 5.000000e-01 : f32
    %364 = vector.broadcast %cst_125 : f32 to vector<16x32xf32>
    %365 = arith.mulf %364, %363 : vector<16x32xf32>
    %cst_126 = arith.constant 5.000000e-01 : f32
    %366 = vector.broadcast %cst_126 : f32 to vector<16x32xf32>
    %367 = arith.addf %365, %366 : vector<16x32xf32>
    %368 = arith.mulf %357, %298 : vector<16x32xf32>
    %369 = arith.mulf %349, %359 : vector<16x32xf32>
    %370 = arith.addf %368, %369 : vector<16x32xf32>
    %371 = math.tanh %370 : vector<16x32xf32>
    %372 = arith.mulf %367, %371 : vector<16x32xf32>
    %373 = arith.truncf %372 : vector<16x32xf32> to vector<16x32xbf16>
    %c5_i32 = arith.constant 5 : i32
    %374 = arith.index_cast %c5_i32 : i32 to index
    %c0_127 = arith.constant 0 : index
    %c0_128 = arith.constant 0 : index
    %375 = vector.load %arg1[%374, %c0_127, %c0_128] : memref<8x16x128xf32, #tpu.memory_space<vmem>>, vector<1x16x128xf32>
    %376 = vector.shape_cast %375 : vector<1x16x128xf32> to vector<16x128xf32>
    %cst_129 = arith.constant dense<0.000000e+00> : vector<16x128xf32>
    %377 = tpu.matmul %338, %3, %cst_129 {dimension_numbers = #tpu.dot_dimension_numbers<[1], [0], [0], [1], [0, 0, 1, 1], [], []>} : vector<16x32xbf16>, vector<32x128xbf16>, vector<16x128xf32> -> vector<16x128xf32>
    %378 = arith.addf %376, %377 : vector<16x128xf32>
    %379 = vector.extract_strided_slice %378 {offsets = [0, 0], sizes = [16, 32], strides = [1, 1]} : vector<16x128xf32> to vector<16x32xf32>
    %cst_130 = arith.constant 5.000000e-01 : f32
    %380 = vector.broadcast %cst_130 : f32 to vector<16x32xf32>
    %381 = arith.mulf %380, %379 : vector<16x32xf32>
    %382 = math.tanh %381 : vector<16x32xf32>
    %cst_131 = arith.constant 5.000000e-01 : f32
    %383 = vector.broadcast %cst_131 : f32 to vector<16x32xf32>
    %384 = arith.mulf %383, %382 : vector<16x32xf32>
    %cst_132 = arith.constant 5.000000e-01 : f32
    %385 = vector.broadcast %cst_132 : f32 to vector<16x32xf32>
    %386 = arith.addf %384, %385 : vector<16x32xf32>
    %387 = vector.extract_strided_slice %378 {offsets = [0, 32], sizes = [16, 32], strides = [1, 1]} : vector<16x128xf32> to vector<16x32xf32>
    %cst_133 = arith.constant 5.000000e-01 : f32
    %388 = vector.broadcast %cst_133 : f32 to vector<16x32xf32>
    %389 = arith.mulf %388, %387 : vector<16x32xf32>
    %390 = math.tanh %389 : vector<16x32xf32>
    %cst_134 = arith.constant 5.000000e-01 : f32
    %391 = vector.broadcast %cst_134 : f32 to vector<16x32xf32>
    %392 = arith.mulf %391, %390 : vector<16x32xf32>
    %cst_135 = arith.constant 5.000000e-01 : f32
    %393 = vector.broadcast %cst_135 : f32 to vector<16x32xf32>
    %394 = arith.addf %392, %393 : vector<16x32xf32>
    %395 = vector.extract_strided_slice %378 {offsets = [0, 64], sizes = [16, 32], strides = [1, 1]} : vector<16x128xf32> to vector<16x32xf32>
    %396 = math.tanh %395 : vector<16x32xf32>
    %397 = vector.extract_strided_slice %378 {offsets = [0, 96], sizes = [16, 32], strides = [1, 1]} : vector<16x128xf32> to vector<16x32xf32>
    %cst_136 = arith.constant 5.000000e-01 : f32
    %398 = vector.broadcast %cst_136 : f32 to vector<16x32xf32>
    %399 = arith.mulf %398, %397 : vector<16x32xf32>
    %400 = math.tanh %399 : vector<16x32xf32>
    %cst_137 = arith.constant 5.000000e-01 : f32
    %401 = vector.broadcast %cst_137 : f32 to vector<16x32xf32>
    %402 = arith.mulf %401, %400 : vector<16x32xf32>
    %cst_138 = arith.constant 5.000000e-01 : f32
    %403 = vector.broadcast %cst_138 : f32 to vector<16x32xf32>
    %404 = arith.addf %402, %403 : vector<16x32xf32>
    %405 = arith.mulf %394, %335 : vector<16x32xf32>
    %406 = arith.mulf %386, %396 : vector<16x32xf32>
    %407 = arith.addf %405, %406 : vector<16x32xf32>
    %408 = math.tanh %407 : vector<16x32xf32>
    %409 = arith.mulf %404, %408 : vector<16x32xf32>
    %410 = arith.truncf %409 : vector<16x32xf32> to vector<16x32xbf16>
    %411 = tpu.concatenate %410, %373 in 1 : vector<16x32xbf16>, vector<16x32xbf16> -> vector<16x64xbf16>
    %cst_139 = arith.constant dense<0.000000e+00> : vector<16x128xf32>
    %412 = tpu.matmul %411, %4, %cst_139 {dimension_numbers = #tpu.dot_dimension_numbers<[1], [0], [0], [1], [0, 0, 1, 1], [], []>} : vector<16x64xbf16>, vector<64x128xbf16>, vector<16x128xf32> -> vector<16x128xf32>
    %413 = arith.addf %412, %5 : vector<16x128xf32>
    %414 = vector.extract_strided_slice %413 {offsets = [0, 0], sizes = [16, 32], strides = [1, 1]} : vector<16x128xf32> to vector<16x32xf32>
    %cst_140 = arith.constant 5.000000e-01 : f32
    %415 = vector.broadcast %cst_140 : f32 to vector<16x32xf32>
    %416 = arith.mulf %415, %414 : vector<16x32xf32>
    %417 = math.tanh %416 : vector<16x32xf32>
    %cst_141 = arith.constant 5.000000e-01 : f32
    %418 = vector.broadcast %cst_141 : f32 to vector<16x32xf32>
    %419 = arith.mulf %418, %417 : vector<16x32xf32>
    %cst_142 = arith.constant 5.000000e-01 : f32
    %420 = vector.broadcast %cst_142 : f32 to vector<16x32xf32>
    %421 = arith.addf %419, %420 : vector<16x32xf32>
    %422 = vector.extract_strided_slice %413 {offsets = [0, 32], sizes = [16, 32], strides = [1, 1]} : vector<16x128xf32> to vector<16x32xf32>
    %cst_143 = arith.constant 5.000000e-01 : f32
    %423 = vector.broadcast %cst_143 : f32 to vector<16x32xf32>
    %424 = arith.mulf %423, %422 : vector<16x32xf32>
    %425 = math.tanh %424 : vector<16x32xf32>
    %cst_144 = arith.constant 5.000000e-01 : f32
    %426 = vector.broadcast %cst_144 : f32 to vector<16x32xf32>
    %427 = arith.mulf %426, %425 : vector<16x32xf32>
    %cst_145 = arith.constant 5.000000e-01 : f32
    %428 = vector.broadcast %cst_145 : f32 to vector<16x32xf32>
    %429 = arith.addf %427, %428 : vector<16x32xf32>
    %430 = vector.extract_strided_slice %413 {offsets = [0, 64], sizes = [16, 32], strides = [1, 1]} : vector<16x128xf32> to vector<16x32xf32>
    %431 = math.tanh %430 : vector<16x32xf32>
    %432 = vector.extract_strided_slice %413 {offsets = [0, 96], sizes = [16, 32], strides = [1, 1]} : vector<16x128xf32> to vector<16x32xf32>
    %cst_146 = arith.constant 5.000000e-01 : f32
    %433 = vector.broadcast %cst_146 : f32 to vector<16x32xf32>
    %434 = arith.mulf %433, %432 : vector<16x32xf32>
    %435 = math.tanh %434 : vector<16x32xf32>
    %cst_147 = arith.constant 5.000000e-01 : f32
    %436 = vector.broadcast %cst_147 : f32 to vector<16x32xf32>
    %437 = arith.mulf %436, %435 : vector<16x32xf32>
    %cst_148 = arith.constant 5.000000e-01 : f32
    %438 = vector.broadcast %cst_148 : f32 to vector<16x32xf32>
    %439 = arith.addf %437, %438 : vector<16x32xf32>
    %440 = arith.mulf %429, %370 : vector<16x32xf32>
    %441 = arith.mulf %421, %431 : vector<16x32xf32>
    %442 = arith.addf %440, %441 : vector<16x32xf32>
    %443 = math.tanh %442 : vector<16x32xf32>
    %444 = arith.mulf %439, %443 : vector<16x32xf32>
    %445 = arith.truncf %444 : vector<16x32xf32> to vector<16x32xbf16>
    %c6_i32 = arith.constant 6 : i32
    %446 = arith.index_cast %c6_i32 : i32 to index
    %c0_149 = arith.constant 0 : index
    %c0_150 = arith.constant 0 : index
    %447 = vector.load %arg1[%446, %c0_149, %c0_150] : memref<8x16x128xf32, #tpu.memory_space<vmem>>, vector<1x16x128xf32>
    %448 = vector.shape_cast %447 : vector<1x16x128xf32> to vector<16x128xf32>
    %cst_151 = arith.constant dense<0.000000e+00> : vector<16x128xf32>
    %449 = tpu.matmul %410, %3, %cst_151 {dimension_numbers = #tpu.dot_dimension_numbers<[1], [0], [0], [1], [0, 0, 1, 1], [], []>} : vector<16x32xbf16>, vector<32x128xbf16>, vector<16x128xf32> -> vector<16x128xf32>
    %450 = arith.addf %448, %449 : vector<16x128xf32>
    %451 = vector.extract_strided_slice %450 {offsets = [0, 0], sizes = [16, 32], strides = [1, 1]} : vector<16x128xf32> to vector<16x32xf32>
    %cst_152 = arith.constant 5.000000e-01 : f32
    %452 = vector.broadcast %cst_152 : f32 to vector<16x32xf32>
    %453 = arith.mulf %452, %451 : vector<16x32xf32>
    %454 = math.tanh %453 : vector<16x32xf32>
    %cst_153 = arith.constant 5.000000e-01 : f32
    %455 = vector.broadcast %cst_153 : f32 to vector<16x32xf32>
    %456 = arith.mulf %455, %454 : vector<16x32xf32>
    %cst_154 = arith.constant 5.000000e-01 : f32
    %457 = vector.broadcast %cst_154 : f32 to vector<16x32xf32>
    %458 = arith.addf %456, %457 : vector<16x32xf32>
    %459 = vector.extract_strided_slice %450 {offsets = [0, 32], sizes = [16, 32], strides = [1, 1]} : vector<16x128xf32> to vector<16x32xf32>
    %cst_155 = arith.constant 5.000000e-01 : f32
    %460 = vector.broadcast %cst_155 : f32 to vector<16x32xf32>
    %461 = arith.mulf %460, %459 : vector<16x32xf32>
    %462 = math.tanh %461 : vector<16x32xf32>
    %cst_156 = arith.constant 5.000000e-01 : f32
    %463 = vector.broadcast %cst_156 : f32 to vector<16x32xf32>
    %464 = arith.mulf %463, %462 : vector<16x32xf32>
    %cst_157 = arith.constant 5.000000e-01 : f32
    %465 = vector.broadcast %cst_157 : f32 to vector<16x32xf32>
    %466 = arith.addf %464, %465 : vector<16x32xf32>
    %467 = vector.extract_strided_slice %450 {offsets = [0, 64], sizes = [16, 32], strides = [1, 1]} : vector<16x128xf32> to vector<16x32xf32>
    %468 = math.tanh %467 : vector<16x32xf32>
    %469 = vector.extract_strided_slice %450 {offsets = [0, 96], sizes = [16, 32], strides = [1, 1]} : vector<16x128xf32> to vector<16x32xf32>
    %cst_158 = arith.constant 5.000000e-01 : f32
    %470 = vector.broadcast %cst_158 : f32 to vector<16x32xf32>
    %471 = arith.mulf %470, %469 : vector<16x32xf32>
    %472 = math.tanh %471 : vector<16x32xf32>
    %cst_159 = arith.constant 5.000000e-01 : f32
    %473 = vector.broadcast %cst_159 : f32 to vector<16x32xf32>
    %474 = arith.mulf %473, %472 : vector<16x32xf32>
    %cst_160 = arith.constant 5.000000e-01 : f32
    %475 = vector.broadcast %cst_160 : f32 to vector<16x32xf32>
    %476 = arith.addf %474, %475 : vector<16x32xf32>
    %477 = arith.mulf %466, %407 : vector<16x32xf32>
    %478 = arith.mulf %458, %468 : vector<16x32xf32>
    %479 = arith.addf %477, %478 : vector<16x32xf32>
    %480 = math.tanh %479 : vector<16x32xf32>
    %481 = arith.mulf %476, %480 : vector<16x32xf32>
    %482 = arith.truncf %481 : vector<16x32xf32> to vector<16x32xbf16>
    %483 = tpu.concatenate %482, %445 in 1 : vector<16x32xbf16>, vector<16x32xbf16> -> vector<16x64xbf16>
    %cst_161 = arith.constant dense<0.000000e+00> : vector<16x128xf32>
    %484 = tpu.matmul %483, %4, %cst_161 {dimension_numbers = #tpu.dot_dimension_numbers<[1], [0], [0], [1], [0, 0, 1, 1], [], []>} : vector<16x64xbf16>, vector<64x128xbf16>, vector<16x128xf32> -> vector<16x128xf32>
    %485 = arith.addf %484, %5 : vector<16x128xf32>
    %486 = vector.extract_strided_slice %485 {offsets = [0, 0], sizes = [16, 32], strides = [1, 1]} : vector<16x128xf32> to vector<16x32xf32>
    %cst_162 = arith.constant 5.000000e-01 : f32
    %487 = vector.broadcast %cst_162 : f32 to vector<16x32xf32>
    %488 = arith.mulf %487, %486 : vector<16x32xf32>
    %489 = math.tanh %488 : vector<16x32xf32>
    %cst_163 = arith.constant 5.000000e-01 : f32
    %490 = vector.broadcast %cst_163 : f32 to vector<16x32xf32>
    %491 = arith.mulf %490, %489 : vector<16x32xf32>
    %cst_164 = arith.constant 5.000000e-01 : f32
    %492 = vector.broadcast %cst_164 : f32 to vector<16x32xf32>
    %493 = arith.addf %491, %492 : vector<16x32xf32>
    %494 = vector.extract_strided_slice %485 {offsets = [0, 32], sizes = [16, 32], strides = [1, 1]} : vector<16x128xf32> to vector<16x32xf32>
    %cst_165 = arith.constant 5.000000e-01 : f32
    %495 = vector.broadcast %cst_165 : f32 to vector<16x32xf32>
    %496 = arith.mulf %495, %494 : vector<16x32xf32>
    %497 = math.tanh %496 : vector<16x32xf32>
    %cst_166 = arith.constant 5.000000e-01 : f32
    %498 = vector.broadcast %cst_166 : f32 to vector<16x32xf32>
    %499 = arith.mulf %498, %497 : vector<16x32xf32>
    %cst_167 = arith.constant 5.000000e-01 : f32
    %500 = vector.broadcast %cst_167 : f32 to vector<16x32xf32>
    %501 = arith.addf %499, %500 : vector<16x32xf32>
    %502 = vector.extract_strided_slice %485 {offsets = [0, 64], sizes = [16, 32], strides = [1, 1]} : vector<16x128xf32> to vector<16x32xf32>
    %503 = math.tanh %502 : vector<16x32xf32>
    %504 = vector.extract_strided_slice %485 {offsets = [0, 96], sizes = [16, 32], strides = [1, 1]} : vector<16x128xf32> to vector<16x32xf32>
    %cst_168 = arith.constant 5.000000e-01 : f32
    %505 = vector.broadcast %cst_168 : f32 to vector<16x32xf32>
    %506 = arith.mulf %505, %504 : vector<16x32xf32>
    %507 = math.tanh %506 : vector<16x32xf32>
    %cst_169 = arith.constant 5.000000e-01 : f32
    %508 = vector.broadcast %cst_169 : f32 to vector<16x32xf32>
    %509 = arith.mulf %508, %507 : vector<16x32xf32>
    %cst_170 = arith.constant 5.000000e-01 : f32
    %510 = vector.broadcast %cst_170 : f32 to vector<16x32xf32>
    %511 = arith.addf %509, %510 : vector<16x32xf32>
    %512 = arith.mulf %501, %442 : vector<16x32xf32>
    %513 = arith.mulf %493, %503 : vector<16x32xf32>
    %514 = arith.addf %512, %513 : vector<16x32xf32>
    %515 = math.tanh %514 : vector<16x32xf32>
    %516 = arith.mulf %511, %515 : vector<16x32xf32>
    %517 = arith.truncf %516 : vector<16x32xf32> to vector<16x32xbf16>
    %c7_i32 = arith.constant 7 : i32
    %518 = arith.index_cast %c7_i32 : i32 to index
    %c0_171 = arith.constant 0 : index
    %c0_172 = arith.constant 0 : index
    %519 = vector.load %arg1[%518, %c0_171, %c0_172] : memref<8x16x128xf32, #tpu.memory_space<vmem>>, vector<1x16x128xf32>
    %520 = vector.shape_cast %519 : vector<1x16x128xf32> to vector<16x128xf32>
    %cst_173 = arith.constant dense<0.000000e+00> : vector<16x128xf32>
    %521 = tpu.matmul %482, %3, %cst_173 {dimension_numbers = #tpu.dot_dimension_numbers<[1], [0], [0], [1], [0, 0, 1, 1], [], []>} : vector<16x32xbf16>, vector<32x128xbf16>, vector<16x128xf32> -> vector<16x128xf32>
    %522 = arith.addf %520, %521 : vector<16x128xf32>
    %523 = vector.extract_strided_slice %522 {offsets = [0, 0], sizes = [16, 32], strides = [1, 1]} : vector<16x128xf32> to vector<16x32xf32>
    %cst_174 = arith.constant 5.000000e-01 : f32
    %524 = vector.broadcast %cst_174 : f32 to vector<16x32xf32>
    %525 = arith.mulf %524, %523 : vector<16x32xf32>
    %526 = math.tanh %525 : vector<16x32xf32>
    %cst_175 = arith.constant 5.000000e-01 : f32
    %527 = vector.broadcast %cst_175 : f32 to vector<16x32xf32>
    %528 = arith.mulf %527, %526 : vector<16x32xf32>
    %cst_176 = arith.constant 5.000000e-01 : f32
    %529 = vector.broadcast %cst_176 : f32 to vector<16x32xf32>
    %530 = arith.addf %528, %529 : vector<16x32xf32>
    %531 = vector.extract_strided_slice %522 {offsets = [0, 32], sizes = [16, 32], strides = [1, 1]} : vector<16x128xf32> to vector<16x32xf32>
    %cst_177 = arith.constant 5.000000e-01 : f32
    %532 = vector.broadcast %cst_177 : f32 to vector<16x32xf32>
    %533 = arith.mulf %532, %531 : vector<16x32xf32>
    %534 = math.tanh %533 : vector<16x32xf32>
    %cst_178 = arith.constant 5.000000e-01 : f32
    %535 = vector.broadcast %cst_178 : f32 to vector<16x32xf32>
    %536 = arith.mulf %535, %534 : vector<16x32xf32>
    %cst_179 = arith.constant 5.000000e-01 : f32
    %537 = vector.broadcast %cst_179 : f32 to vector<16x32xf32>
    %538 = arith.addf %536, %537 : vector<16x32xf32>
    %539 = vector.extract_strided_slice %522 {offsets = [0, 64], sizes = [16, 32], strides = [1, 1]} : vector<16x128xf32> to vector<16x32xf32>
    %540 = math.tanh %539 : vector<16x32xf32>
    %541 = vector.extract_strided_slice %522 {offsets = [0, 96], sizes = [16, 32], strides = [1, 1]} : vector<16x128xf32> to vector<16x32xf32>
    %cst_180 = arith.constant 5.000000e-01 : f32
    %542 = vector.broadcast %cst_180 : f32 to vector<16x32xf32>
    %543 = arith.mulf %542, %541 : vector<16x32xf32>
    %544 = math.tanh %543 : vector<16x32xf32>
    %cst_181 = arith.constant 5.000000e-01 : f32
    %545 = vector.broadcast %cst_181 : f32 to vector<16x32xf32>
    %546 = arith.mulf %545, %544 : vector<16x32xf32>
    %cst_182 = arith.constant 5.000000e-01 : f32
    %547 = vector.broadcast %cst_182 : f32 to vector<16x32xf32>
    %548 = arith.addf %546, %547 : vector<16x32xf32>
    %549 = arith.mulf %538, %479 : vector<16x32xf32>
    %550 = arith.mulf %530, %540 : vector<16x32xf32>
    %551 = arith.addf %549, %550 : vector<16x32xf32>
    %552 = math.tanh %551 : vector<16x32xf32>
    %553 = arith.mulf %548, %552 : vector<16x32xf32>
    %554 = arith.truncf %553 : vector<16x32xf32> to vector<16x32xbf16>
    %555 = tpu.concatenate %554, %517 in 1 : vector<16x32xbf16>, vector<16x32xbf16> -> vector<16x64xbf16>
    %cst_183 = arith.constant dense<0.000000e+00> : vector<16x128xf32>
    %556 = tpu.matmul %555, %4, %cst_183 {dimension_numbers = #tpu.dot_dimension_numbers<[1], [0], [0], [1], [0, 0, 1, 1], [], []>} : vector<16x64xbf16>, vector<64x128xbf16>, vector<16x128xf32> -> vector<16x128xf32>
    %557 = arith.addf %556, %5 : vector<16x128xf32>
    %558 = vector.extract_strided_slice %557 {offsets = [0, 0], sizes = [16, 32], strides = [1, 1]} : vector<16x128xf32> to vector<16x32xf32>
    %cst_184 = arith.constant 5.000000e-01 : f32
    %559 = vector.broadcast %cst_184 : f32 to vector<16x32xf32>
    %560 = arith.mulf %559, %558 : vector<16x32xf32>
    %561 = math.tanh %560 : vector<16x32xf32>
    %cst_185 = arith.constant 5.000000e-01 : f32
    %562 = vector.broadcast %cst_185 : f32 to vector<16x32xf32>
    %563 = arith.mulf %562, %561 : vector<16x32xf32>
    %cst_186 = arith.constant 5.000000e-01 : f32
    %564 = vector.broadcast %cst_186 : f32 to vector<16x32xf32>
    %565 = arith.addf %563, %564 : vector<16x32xf32>
    %566 = vector.extract_strided_slice %557 {offsets = [0, 32], sizes = [16, 32], strides = [1, 1]} : vector<16x128xf32> to vector<16x32xf32>
    %cst_187 = arith.constant 5.000000e-01 : f32
    %567 = vector.broadcast %cst_187 : f32 to vector<16x32xf32>
    %568 = arith.mulf %567, %566 : vector<16x32xf32>
    %569 = math.tanh %568 : vector<16x32xf32>
    %cst_188 = arith.constant 5.000000e-01 : f32
    %570 = vector.broadcast %cst_188 : f32 to vector<16x32xf32>
    %571 = arith.mulf %570, %569 : vector<16x32xf32>
    %cst_189 = arith.constant 5.000000e-01 : f32
    %572 = vector.broadcast %cst_189 : f32 to vector<16x32xf32>
    %573 = arith.addf %571, %572 : vector<16x32xf32>
    %574 = vector.extract_strided_slice %557 {offsets = [0, 64], sizes = [16, 32], strides = [1, 1]} : vector<16x128xf32> to vector<16x32xf32>
    %575 = math.tanh %574 : vector<16x32xf32>
    %576 = vector.extract_strided_slice %557 {offsets = [0, 96], sizes = [16, 32], strides = [1, 1]} : vector<16x128xf32> to vector<16x32xf32>
    %cst_190 = arith.constant 5.000000e-01 : f32
    %577 = vector.broadcast %cst_190 : f32 to vector<16x32xf32>
    %578 = arith.mulf %577, %576 : vector<16x32xf32>
    %579 = math.tanh %578 : vector<16x32xf32>
    %cst_191 = arith.constant 5.000000e-01 : f32
    %580 = vector.broadcast %cst_191 : f32 to vector<16x32xf32>
    %581 = arith.mulf %580, %579 : vector<16x32xf32>
    %cst_192 = arith.constant 5.000000e-01 : f32
    %582 = vector.broadcast %cst_192 : f32 to vector<16x32xf32>
    %583 = arith.addf %581, %582 : vector<16x32xf32>
    %584 = arith.mulf %573, %514 : vector<16x32xf32>
    %585 = arith.mulf %565, %575 : vector<16x32xf32>
    %586 = arith.addf %584, %585 : vector<16x32xf32>
    %587 = math.tanh %586 : vector<16x32xf32>
    %588 = arith.mulf %583, %587 : vector<16x32xf32>
    %589 = arith.truncf %588 : vector<16x32xf32> to vector<16x32xbf16>
    %c8_i32 = arith.constant 8 : i32
    %c0_193 = arith.constant 0 : index
    %c0_194 = arith.constant 0 : index
    %c0_195 = arith.constant 0 : index
    %590 = vector.load %arg8[%c0_193, %c0_194, %c0_195] : memref<2x16x32xbf16, #tpu.memory_space<vmem>>, vector<1x16x32xbf16>
    %591 = vector.shape_cast %590 : vector<1x16x32xbf16> to vector<16x32xbf16>
    %592 = vector.shape_cast %554 : vector<16x32xbf16> to vector<1x16x32xbf16>
    tpu.vector_store %arg8[%c0_193, %c0_194, %c0_195], %592 {strides = array<i32>} : memref<2x16x32xbf16, #tpu.memory_space<vmem>>, vector<1x16x32xbf16>,
    %c0_196 = arith.constant 0 : index
    %c0_197 = arith.constant 0 : index
    %c0_198 = arith.constant 0 : index
    %593 = vector.load %arg9[%c0_196, %c0_197, %c0_198] : memref<2x16x32xf32, #tpu.memory_space<vmem>>, vector<1x16x32xf32>
    %594 = vector.shape_cast %593 : vector<1x16x32xf32> to vector<16x32xf32>
    %595 = vector.shape_cast %551 : vector<16x32xf32> to vector<1x16x32xf32>
    tpu.vector_store %arg9[%c0_196, %c0_197, %c0_198], %595 {strides = array<i32>} : memref<2x16x32xf32, #tpu.memory_space<vmem>>, vector<1x16x32xf32>,
    %c1_199 = arith.constant 1 : index
    %c0_200 = arith.constant 0 : index
    %c0_201 = arith.constant 0 : index
    %596 = vector.load %arg8[%c1_199, %c0_200, %c0_201] : memref<2x16x32xbf16, #tpu.memory_space<vmem>>, vector<1x16x32xbf16>
    %597 = vector.shape_cast %596 : vector<1x16x32xbf16> to vector<16x32xbf16>
    %598 = vector.shape_cast %589 : vector<16x32xbf16> to vector<1x16x32xbf16>
    tpu.vector_store %arg8[%c1_199, %c0_200, %c0_201], %598 {strides = array<i32>} : memref<2x16x32xbf16, #tpu.memory_space<vmem>>, vector<1x16x32xbf16>,
    %c1_202 = arith.constant 1 : index
    %c0_203 = arith.constant 0 : index
    %c0_204 = arith.constant 0 : index
    %599 = vector.load %arg9[%c1_202, %c0_203, %c0_204] : memref<2x16x32xf32, #tpu.memory_space<vmem>>, vector<1x16x32xf32>
    %600 = vector.shape_cast %599 : vector<1x16x32xf32> to vector<16x32xf32>
    %601 = vector.shape_cast %586 : vector<16x32xf32> to vector<1x16x32xf32>
    tpu.vector_store %arg9[%c1_202, %c0_203, %c0_204], %601 {strides = array<i32>} : memref<2x16x32xf32, #tpu.memory_space<vmem>>, vector<1x16x32xf32>,
    %c0_i32_205 = arith.constant 0 : i32
    %602 = arith.cmpi eq, %arg0, %c0_i32_205 : i32
    %603 = arith.extui %602 : i1 to i32
    %c0_i32_206 = arith.constant 0 : i32
    %604 = arith.cmpi ne, %603, %c0_i32_206 : i32
    scf.if %604 {
      %c0_207 = arith.constant 0 : index
      %c0_208 = arith.constant 0 : index
      %605 = vector.load %arg5[%c0_207, %c0_208] : memref<32x128xbf16, #tpu.memory_space<vmem>>, vector<32x128xbf16>
      %cst_209 = arith.constant dense<0.000000e+00> : vector<16x128xf32>
      %606 = tpu.matmul %589, %605, %cst_209 {dimension_numbers = #tpu.dot_dimension_numbers<[1], [0], [0], [1], [0, 0, 1, 1], [], []>} : vector<16x32xbf16>, vector<32x128xbf16>, vector<16x128xf32> -> vector<16x128xf32>
      %c0_210 = arith.constant 0 : index
      %c0_211 = arith.constant 0 : index
      %607 = vector.load %arg6[%c0_210, %c0_211] : memref<1x128xf32, #tpu.memory_space<vmem>>, vector<1x128xf32>
      %608 = vector.broadcast %607 : vector<1x128xf32> to vector<16x128xf32>
      %609 = arith.addf %606, %608 : vector<16x128xf32>
      %c0_212 = arith.constant 0 : index
      %c0_213 = arith.constant 0 : index
      %610 = vector.load %arg7[%c0_212, %c0_213] : memref<16x128xf32, #tpu.memory_space<vmem>>, vector<16x128xf32>
      tpu.vector_store %arg7[%c0_212, %c0_213], %609 {strides = array<i32>} : memref<16x128xf32, #tpu.memory_space<vmem>>, vector<16x128xf32>,
    } else {
    }
    return
  }
  func.func @transform_0(%arg0: i32) -> (i32, i32, i32) {
    %c0_i32 = arith.constant 0 : i32
    %c0_i32_0 = arith.constant 0 : i32
    %c0_i32_1 = arith.constant 0 : i32
    return %arg0, %c0_i32, %c0_i32_0 : i32, i32, i32
  }
  func.func @transform_1(%arg0: i32) -> (i32, i32) {
    %c0_i32 = arith.constant 0 : i32
    %c0_i32_0 = arith.constant 0 : i32
    %c0_i32_1 = arith.constant 0 : i32
    return %c0_i32, %c0_i32_0 : i32, i32
  }
  func.func @transform_2(%arg0: i32) -> (i32, i32) {
    %c0_i32 = arith.constant 0 : i32
    %c0_i32_0 = arith.constant 0 : i32
    %c0_i32_1 = arith.constant 0 : i32
    return %c0_i32, %c0_i32_0 : i32, i32
  }
  func.func @transform_3(%arg0: i32) -> (i32, i32) {
    %c0_i32 = arith.constant 0 : i32
    %c0_i32_0 = arith.constant 0 : i32
    %c0_i32_1 = arith.constant 0 : i32
    return %c0_i32, %c0_i32_0 : i32, i32
  }
  func.func @transform_4(%arg0: i32) -> (i32, i32) {
    %c0_i32 = arith.constant 0 : i32
    %c0_i32_0 = arith.constant 0 : i32
    %c0_i32_1 = arith.constant 0 : i32
    return %c0_i32, %c0_i32_0 : i32, i32
  }
  func.func @transform_5(%arg0: i32) -> (i32, i32) {
    %c0_i32 = arith.constant 0 : i32
    %c0_i32_0 = arith.constant 0 : i32
    %c0_i32_1 = arith.constant 0 : i32
    return %c0_i32, %c0_i32_0 : i32, i32
  }
  func.func @transform_6(%arg0: i32) -> (i32, i32) {
    %c0_i32 = arith.constant 0 : i32
    %c0_i32_0 = arith.constant 0 : i32
    %c0_i32_1 = arith.constant 0 : i32
    return %c0_i32, %c0_i32_0 : i32, i32
  }
}

</mosaic_0001>

<bundles_post_ra>
// kernel: lstm_ver1_forward.1
= control target key start
LH: loop header
LB: loop body
LE: loop exit
PB: predicated region body
PF: predicated region fallthrough
CT: control target
= control target key end

     0   :  { %vm28_vm0 = vcmask 261120   ;;  %v2223_v0 = vmov 0.0   ;;  %vm2224_vm1 = vmmov 0   ;;  %v2225_v2 = vmov 0   ;;  %s2226_s25 = smov 32   ;;  %s2227_s30 = smov 64   ;;  %s2833_s1 = inlined_call_operand.vmem [shape: bf16[32,128], index: 1, kind: input, shape index: {}]   ;;  %s2834_s0 = inlined_call_operand.vmem [shape: f32[8,16,128], index: 0, kind: input, shape index: {}]   ;;  %s2835_s2 = inlined_call_operand.vmem [shape: bf16[64,128], index: 2, kind: input, shape index: {}]   ;;  %s2836_s3 = inlined_call_operand.vmem [shape: f32[16,128], index: 3, kind: input, shape index: {}]   ;;  %s2837_s4 = inlined_call_operand.vmem [shape: bf16[32,128], index: 4, kind: input, shape index: {}]   ;;  %s2838_s5 = inlined_call_operand.vmem [shape: f32[1,128], index: 5, kind: input, shape index: {}]   ;;  %s2839_s6 = inlined_call_operand.vmem [shape: f32[16,128], index: 6, kind: output, shape index: {}]  }
   0x1   :  { %1841 = vmatprep.subr.bf16.mxu0 %v2223_v0  ;;  %v2268_v1 = vld [vmem:[%s2833_s1] sm:$0xff]   ;;  %1845 = vmatprep.mubr.msk.bf16.mxu0 %vm2224_vm1, %v2223_v0  ;;  %29 = vst.msk [vmem:[#allocation2] sm:$0xff] %vm28_vm0, %v2225_v2  ;;  %30 = vst.msk [vmem:[#allocation2 + $0x8] sm:$0xff] %vm28_vm0, %v2225_v2  ;;  %v2289_v3 = vld [vmem:[%s2833_s1 + $0x8] sm:$0xff]   ;;  %vm204_vm2 = vcmask 523264  }
   0x2   :  { %31 = vst.msk [vmem:[#allocation3] sm:$0xff] %vm28_vm0, %v2223_v0  ;;  %32 = vst.msk [vmem:[#allocation3 + $0x8] sm:$0xff] %vm28_vm0, %v2223_v0  ;;  %1849 = vmatprep.subr.bf16.mxu1 %v2223_v0  ;;  %1857 = vmatprep.mubr.msk.bf16.mxu1 %vm2224_vm1, %v2223_v0  ;;  %v57_v7 = vld [vmem:[%s2834_s0] sm:$0xff]  ;;  %v58_v9 = vld [vmem:[%s2834_s0 + $0x8] sm:$0xff] }
   0x3   :  { %33 = vst.msk [vmem:[#allocation3 + $0x10] sm:$0xff] %vm28_vm0, %v2223_v0  ;;  %34 = vst.msk [vmem:[#allocation3 + $0x18] sm:$0xff] %vm28_vm0, %v2223_v0  ;;  %1842 = vmatpush3.bf16.msra.mxu0 %v2268_v1  ;;  %v2322_v37 = vld [vmem:[%s2835_s2] sm:$0xff]   ;;  %v2328_v38 = vld [vmem:[%s2835_s2 + $0x8] sm:$0xff]  }
   0x4   :  { %1843 = vmatprep.subr.bf16.mxu0 %v2223_v0  ;;  %1850 = vmatpush3.bf16.msra.mxu1 %v2322_v37  ;;  %v2336_v40 = vld [vmem:[%s2835_s2 + $0x10] sm:$0xff]   ;;  %v2344_v43 = vld [vmem:[%s2835_s2 + $0x18] sm:$0xff]   ;;  %v2373_v52 = vld [vmem:[%s2836_s3] sm:$0xff] }
   0x5   :  { %1851 = vmatprep.subr.bf16.mxu1 %v2223_v0  ;;  %v1742_v54 = vld [vmem:[%s2834_s0 + $0x10] sm:$0xff]  ;;  %v2382_v60 = vld [vmem:[%s2836_s3 + $0x8] sm:$0xff] }
   0x7   :  { %1844 = vmatpush3.bf16.msra.mxu0 %v2289_v3 }
   0x8   :  { %v49_v4 = vld [vmem:[#allocation2] sm:$0xff]  ;;  %1861 = vmatprep.subr.bf16.mxu0 %v2223_v0  ;;  %1852 = vmatpush3.bf16.msra.mxu1 %v2328_v38  ;;  %v53_v42 = vld [vmem:[#allocation2 + $0x8] sm:$0xff] }
   0x9   :  { %v50_v5 = vld [vmem:[#allocation3] sm:$0xff]  ;;  %v51_v6 = vld [vmem:[#allocation3 + $0x8] sm:$0xff]  ;;  %1853 = vmatprep.subr.bf16.mxu1 %v2223_v0 }
   0xa   :  { %130 = vrot.lane.b32.xlu1 %v50_v5, %s2226_s25  ;;  %1846 = vmatmul.mubr.msk.bf16.vlgmr.msra.gmra.mrb[0].mxu0 %vm28_vm0, %v49_v4  ;;  %v1743_v5 = vld [vmem:[%s2834_s0 + $0x18] sm:$0xff] }
   0xb   :  { %1862 = vmatpush3.bf16.msra.mxu0 %v2268_v1  ;;  %1865 = vmatprep.mubr.msk.bf16.mxu0 %vm2224_vm1, %v2223_v0 }
   0xc   :  { %1863 = vmatprep.subr.bf16.mxu0 %v2223_v0  ;;  %1854 = vmatpush3.bf16.msra.mxu1 %v2336_v40 }
   0xd   :  { %1855 = vmatprep.subr.bf16.mxu1 %v2223_v0 }
   0xe   :  { %132 = vrot.lane.b32.xlu1 %v51_v6, %s2226_s25 }
   0xf   :  { %1864 = vmatpush3.bf16.msra.mxu0 %v2289_v3 }
  0x10   :  { %1869 = vmatprep.subr.bf16.mxu0 %v2223_v0  ;;  %1856 = vmatpush3.bf16.msra.mxu1 %v2344_v43 }
  0x11   :  { %1881 = vmatprep.subr.bf16.mxu1 %v2223_v0 }
  0x7c   :  { %v131_v29 = vpop.permute.xlu1 %130 }
  0x80   :  { %v133_v31 = vpop.permute.xlu1 %132 }
  0xdd   :  { %v109_v8 = vpop.f32.mrb[0].mxu0 }
  0xde   :  { %v116_v10 = vadd.f32 %v109_v8, %v57_v7  ;;  %v1847_v11 = vpop.f32.mrb[1].mxu0 }
  0xdf   :  { %v112_v12 = vpop.f32.mrb[2].mxu0 }
  0xe0   :  { %2023 = vtanh.f32 %v116_v10  ;;  %v117_v13 = vadd.f32 %v112_v12, %v58_v9  ;;  %v1848_v14 = vpop.f32.mrb[3].mxu0  ;;  %v118_v17 = vmul.f32 0.5, %v116_v10  ;;  %v55_v10 = vld [vmem:[#allocation3 + $0x10] sm:$0xff]  ;;  %v56_v12 = vld [vmem:[#allocation3 + $0x18] sm:$0xff] }
  0xe2   :  { %2025 = vtanh.f32 %v117_v13  ;;  %v119_v18 = vmul.f32 0.5, %v117_v13 }
  0xe3   :  { %2027 = vtanh.f32 %v118_v17 }
  0xe4   :  { %2029 = vtanh.f32 %v119_v18 }
  0xea   :  { %v2024_v15 = vpop.eup %2023 }
  0xeb   :  { %140 = vrot.lane.b32.xlu0 %v2024_v15, %s2227_s30 }
  0xec   :  { %v2026_v16 = vpop.eup %2025 }
  0xed   :  { %v2028_v19 = vpop.eup %2027 }
  0xee   :  { %v122_v20 = vmul.f32 0.5, %v2028_v19  ;;  %v2030_v21 = vpop.eup %2029 }
  0xef   :  { %142 = vrot.lane.b32.xlu0 %v2026_v16, %s2227_s30  ;;  %v123_v22 = vmul.f32 0.5, %v2030_v21 }
  0xf0   :  { %v124_v23 = vadd.f32 0.5, %v122_v20 }
  0xf1   :  { %v125_v26 = vadd.f32 0.5, %v123_v22 }
  0xf2   :  { %v136_v30 = vmul.f32 %v131_v29, %v124_v23 }
  0xf3   :  { %v137_v34 = vmul.f32 %v133_v31, %v125_v26 }
 0x15d   :  { %v141_v24 = vpop.permute.xlu0 %140 }
 0x15e   :  { %v146_v25 = vmul.f32 %v141_v24, %v124_v23 }
 0x160   :  { %150 = vrot.lane.b32.xlu0 %v146_v25, %s2226_s25 }
 0x161   :  { %v143_v27 = vpop.permute.xlu0 %142 }
 0x162   :  { %v147_v28 = vmul.f32 %v143_v27, %v125_v26 }
 0x164   :  { %152 = vrot.lane.b32.xlu1 %v147_v28, %s2226_s25 }
 0x1d2   :  { %v151_v32 = vpop.permute.xlu0 %150 }
 0x1d3   :  { %v2313_v33 = vadd.f32 %v151_v32, %v136_v30 }
 0x1d5   :  { %2031 = vtanh.f32 %v2313_v33 }
 0x1d6   :  { %v153_v35 = vpop.permute.xlu1 %152 }
 0x1d7   :  { %v2316_v36 = vadd.f32 %v153_v35, %v137_v34 }
 0x1d9   :  { %2033 = vtanh.f32 %v2316_v36 }
 0x1df   :  { %v2032_v39 = vpop.eup %2031 }
 0x1e0   :  { %162 = vrot.lane.b32.xlu0 %v2032_v39, %s2227_s30 }
 0x1e3   :  { %v2034_v41 = vpop.eup %2033 }
 0x1e4   :  { %164 = vrot.lane.b32.xlu1 %v2034_v41, %s2227_s30 }
 0x1e8   :  { %175 = vrot.lane.b32.xlu1 %v53_v42, %s2226_s25 }
 0x252   :  { %v163_v44 = vpop.permute.xlu0 %162 }
 0x253   :  { %v168_v46 = vmul.f32 %v163_v44, %v124_v23 }
 0x256   :  { %v165_v45 = vpop.permute.xlu1 %164 }
 0x257   :  { %v169_v47 = vmul.f32 %v165_v45, %v125_v26 }
 0x259   :  { %v170_v48 = vpack.c.bf16 %v169_v47, %v168_v46 }
 0x25a   :  { %v176_v49 = vpop.permute.xlu1 %175 }
 0x25b   :  { %172 = vrot.lane.b32.xlu0 %v170_v48, %s2226_s25 }
 0x2cd   :  { %v173_v50 = vpop.permute.xlu0 %172 }
 0x2ce   :  { %1866 = vmatmul.mubr.msk.bf16.vlgmr.msra.gmra.mrb[4].mxu0 %vm28_vm0, %v173_v50  ;;  %v179_v51 = vsel %vm28_vm0, %v173_v50, %v176_v49 }
 0x2cf   :  { %1858 = vmatmul.mubr.msk.bf16.vlgmr.msra.gmra.mrb[0].mxu1 %vm204_vm2, %v179_v51  ;;  %1870 = vmatpush3.bf16.msra.mxu0 %v2322_v37 }
 0x2d0   :  { %1871 = vmatprep.subr.bf16.mxu0 %v2223_v0  ;;  %1882 = vmatpush3.bf16.msra.mxu1 %v2268_v1 }
 0x2d1   :  { %1883 = vmatprep.subr.bf16.mxu1 %v2223_v0  ;;  %1885 = vmatprep.mubr.msk.bf16.mxu1 %vm2224_vm1, %v2223_v0 }
 0x2d2   :  { %1877 = vmatprep.mubr.msk.bf16.mxu0 %vm2224_vm1, %v2223_v0 }
 0x2d3   :  { %1872 = vmatpush3.bf16.msra.mxu0 %v2328_v38 }
 0x2d4   :  { %1873 = vmatprep.subr.bf16.mxu0 %v2223_v0  ;;  %1884 = vmatpush3.bf16.msra.mxu1 %v2289_v3 }
 0x2d5   :  { %1889 = vmatprep.subr.bf16.mxu1 %v2223_v0 }
 0x2d7   :  { %1874 = vmatpush3.bf16.msra.mxu0 %v2336_v40 }
 0x2d8   :  { %1875 = vmatprep.subr.bf16.mxu0 %v2223_v0 }
 0x2db   :  { %1876 = vmatpush3.bf16.msra.mxu0 %v2344_v43 }
 0x2dc   :  { %1901 = vmatprep.subr.bf16.mxu0 %v2223_v0 }
 0x3a1   :  { %v340_v53 = vpop.f32.mrb[4].mxu0 }
 0x3a2   :  { %v241_v55 = vpop.f32.mrb[0].mxu1  ;;  %v1867_v56 = vpop.f32.mrb[5].mxu0  ;;  %v347_v63 = vadd.f32 %v1742_v54, %v340_v53 }
 0x3a3   :  { %v242_v57 = vadd.f32 %v241_v55, %v2373_v52  ;;  %v1859_v58 = vpop.f32.mrb[1].mxu1  ;;  %v343_v59 = vpop.f32.mrb[6].mxu0 }
 0x3a4   :  { %v244_v61 = vpop.f32.mrb[2].mxu1  ;;  %v1868_v62 = vpop.f32.mrb[7].mxu0  ;;  %v348_v6 = vadd.f32 %v1743_v5, %v343_v59  ;;  %v349_v14 = vmul.f32 0.5, %v347_v63 }
 0x3a5   :  { %2035 = vtanh.f32 %v242_v57  ;;  %v1860_v2 = vpop.f32.mrb[3].mxu1  ;;  %v245_v4 = vadd.f32 %v244_v61, %v2382_v60  ;;  %v248_v13 = vmul.f32 0.5, %v242_v57 }
 0x3a6   :  { %2037 = vtanh.f32 %v347_v63  ;;  %v350_v16 = vmul.f32 0.5, %v348_v6 }
 0x3a7   :  { %2039 = vtanh.f32 %v245_v4  ;;  %v249_v15 = vmul.f32 0.5, %v245_v4 }
 0x3a8   :  { %2041 = vtanh.f32 %v348_v6 }
 0x3a9   :  { %2043 = vtanh.f32 %v248_v13 }
 0x3aa   :  { %2045 = vtanh.f32 %v349_v14  ;;  %v1746_v14 = vld [vmem:[%s2834_s0 + $0x20] sm:$0xff] }
 0x3ab   :  { %2047 = vtanh.f32 %v249_v15 }
 0x3ac   :  { %2049 = vtanh.f32 %v350_v16 }
 0x3af   :  { %v2036_v7 = vpop.eup %2035 }
 0x3b0   :  { %270 = vrot.lane.b32.xlu0 %v2036_v7, %s2227_s30  ;;  %v2038_v8 = vpop.eup %2037 }
 0x3b1   :  { %v2040_v9 = vpop.eup %2039 }
 0x3b2   :  { %272 = vrot.lane.b32.xlu1 %v2040_v9, %s2227_s30  ;;  %v2042_v11 = vpop.eup %2041 }
 0x3b3   :  { %v2044_v17 = vpop.eup %2043 }
 0x3b4   :  { %363 = vrot.lane.b32.xlu0 %v2038_v8, %s2227_s30  ;;  %v252_v18 = vmul.f32 0.5, %v2044_v17  ;;  %v2046_v19 = vpop.eup %2045 }
 0x3b5   :  { %v2048_v20 = vpop.eup %2047  ;;  %v353_v21 = vmul.f32 0.5, %v2046_v19 }
 0x3b6   :  { %365 = vrot.lane.b32.xlu1 %v2042_v11, %s2227_s30  ;;  %v254_v22 = vadd.f32 0.5, %v252_v18  ;;  %v253_v24 = vmul.f32 0.5, %v2048_v20  ;;  %v2050_v26 = vpop.eup %2049 }
 0x3b7   :  { %v355_v27 = vadd.f32 0.5, %v353_v21  ;;  %v354_v29 = vmul.f32 0.5, %v2050_v26 }
 0x3b8   :  { %260 = vrot.lane.b32.xlu0 %v55_v10, %s2226_s25  ;;  %v255_v30 = vadd.f32 0.5, %v253_v24 }
 0x3b9   :  { %v356_v35 = vadd.f32 0.5, %v354_v29  ;;  %v359_v48 = vmul.f32 %v355_v27, %v2313_v33 }
 0x3ba   :  { %262 = vrot.lane.b32.xlu1 %v56_v12, %s2226_s25 }
 0x3bb   :  { %v360_v55 = vmul.f32 %v356_v35, %v2316_v36 }
 0x422   :  { %v271_v23 = vpop.permute.xlu0 %270 }
 0x423   :  { %v276_v25 = vmul.f32 %v271_v23, %v254_v22 }
 0x424   :  { %v273_v32 = vpop.permute.xlu1 %272 }
 0x425   :  { %280 = vrot.lane.b32.xlu0 %v276_v25, %s2226_s25  ;;  %v277_v34 = vmul.f32 %v273_v32, %v255_v30  ;;  %v1747_v25 = vld [vmem:[%s2834_s0 + $0x28] sm:$0xff] }
 0x426   :  { %v364_v28 = vpop.permute.xlu0 %363 }
 0x427   :  { %v369_v31 = vmul.f32 %v364_v28, %v355_v27  ;;  %282 = vrot.lane.b32.xlu1 %v277_v34, %s2226_s25 }
 0x428   :  { %v366_v39 = vpop.permute.xlu1 %365 }
 0x429   :  { %373 = vrot.lane.b32.xlu0 %v369_v31, %s2226_s25  ;;  %v370_v41 = vmul.f32 %v366_v39, %v356_v35 }
 0x42a   :  { %v261_v42 = vpop.permute.xlu0 %260 }
 0x42b   :  { %375 = vrot.lane.b32.xlu1 %v370_v41, %s2226_s25  ;;  %v266_v44 = vmul.f32 %v261_v42, %v254_v22 }
 0x42c   :  { %v263_v47 = vpop.permute.xlu1 %262 }
 0x42d   :  { %v267_v50 = vmul.f32 %v263_v47, %v255_v30 }
 0x497   :  { %v281_v45 = vpop.permute.xlu0 %280 }
 0x498   :  { %v2398_v46 = vadd.f32 %v281_v45, %v266_v44 }
 0x499   :  { %v283_v53 = vpop.permute.xlu1 %282 }
 0x49a   :  { %2051 = vtanh.f32 %v2398_v46  ;;  %v2404_v54 = vadd.f32 %v283_v53, %v267_v50 }
 0x49b   :  { %v374_v49 = vpop.permute.xlu0 %373 }
 0x49c   :  { %v2402_v51 = vadd.f32 %v374_v49, %v359_v48 }
 0x49d   :  { %v376_v56 = vpop.permute.xlu1 %375 }
 0x49e   :  { %2053 = vtanh.f32 %v2402_v51  ;;  %v2409_v57 = vadd.f32 %v376_v56, %v360_v55 }
 0x49f   :  { %2055 = vtanh.f32 %v2404_v54 }
 0x4a0   :  { %2057 = vtanh.f32 %v2409_v57 }
 0x4a4   :  { %v2052_v58 = vpop.eup %2051 }
 0x4a5   :  { %292 = vrot.lane.b32.xlu0 %v2052_v58, %s2227_s30 }
 0x4a8   :  { %v2054_v33 = vpop.eup %2053 }
 0x4a9   :  { %385 = vrot.lane.b32.xlu0 %v2054_v33, %s2227_s30  ;;  %v2056_v59 = vpop.eup %2055 }
 0x4aa   :  { %294 = vrot.lane.b32.xlu1 %v2056_v59, %s2227_s30  ;;  %v2058_v61 = vpop.eup %2057 }
 0x4ae   :  { %387 = vrot.lane.b32.xlu1 %v2058_v61, %s2227_s30 }
 0x517   :  { %v293_v62 = vpop.permute.xlu0 %292 }
 0x518   :  { %v298_v36 = vmul.f32 %v293_v62, %v254_v22 }
 0x51b   :  { %v386_v4 = vpop.permute.xlu0 %385 }
 0x51c   :  { %v295_v63 = vpop.permute.xlu1 %294  ;;  %v391_v7 = vmul.f32 %v386_v4, %v355_v27 }
 0x51d   :  { %v299_v2 = vmul.f32 %v295_v63, %v255_v30 }
 0x51f   :  { %v300_v5 = vpack.c.bf16 %v299_v2, %v298_v36 }
 0x520   :  { %v388_v6 = vpop.permute.xlu1 %387 }
 0x521   :  { %v392_v8 = vmul.f32 %v388_v6, %v356_v35  ;;  %398 = vrot.lane.b32.xlu1 %v300_v5, %s2227_s30 }
 0x523   :  { %v393_v9 = vpack.c.bf16 %v392_v8, %v391_v7 }
 0x525   :  { %395 = vrot.lane.b32.xlu0 %v393_v9, %s2226_s25 }
 0x593   :  { %v399_v10 = vpop.permute.xlu1 %398 }
 0x597   :  { %v396_v11 = vpop.permute.xlu0 %395 }
 0x598   :  { %v402_v12 = vsel %vm28_vm0, %v396_v11, %v399_v10  ;;  %1886 = vmatmul.mubr.msk.bf16.vlgmr.msra.gmra.mrb[4].mxu1 %vm28_vm0, %v396_v11 }
 0x599   :  { %1878 = vmatmul.mubr.msk.bf16.vlgmr.msra.gmra.mrb[8].mxu0 %vm204_vm2, %v402_v12  ;;  %1890 = vmatpush3.bf16.msra.mxu1 %v2322_v37 }
 0x59a   :  { %1891 = vmatprep.subr.bf16.mxu1 %v2223_v0  ;;  %1902 = vmatpush3.bf16.msra.mxu0 %v2268_v1 }
 0x59b   :  { %1903 = vmatprep.subr.bf16.mxu0 %v2223_v0  ;;  %1905 = vmatprep.mubr.msk.bf16.mxu0 %vm2224_vm1, %v2223_v0 }
 0x59c   :  { %1897 = vmatprep.mubr.msk.bf16.mxu1 %vm2224_vm1, %v2223_v0 }
 0x59d   :  { %1892 = vmatpush3.bf16.msra.mxu1 %v2328_v38 }
 0x59e   :  { %1893 = vmatprep.subr.bf16.mxu1 %v2223_v0  ;;  %1904 = vmatpush3.bf16.msra.mxu0 %v2289_v3 }
 0x59f   :  { %1909 = vmatprep.subr.bf16.mxu0 %v2223_v0 }
 0x5a1   :  { %1894 = vmatpush3.bf16.msra.mxu1 %v2336_v40 }
 0x5a2   :  { %1895 = vmatprep.subr.bf16.mxu1 %v2223_v0 }
 0x5a5   :  { %1896 = vmatpush3.bf16.msra.mxu1 %v2344_v43 }
 0x5a6   :  { %1921 = vmatprep.subr.bf16.mxu1 %v2223_v0 }
 0x66b   :  { %v530_v13 = vpop.f32.mrb[4].mxu1 }
 0x66c   :  { %v439_v15 = vpop.f32.mrb[8].mxu0  ;;  %v1887_v16 = vpop.f32.mrb[5].mxu1  ;;  %v537_v22 = vadd.f32 %v1746_v14, %v530_v13 }
 0x66d   :  { %v440_v17 = vadd.f32 %v439_v15, %v2373_v52  ;;  %v1879_v18 = vpop.f32.mrb[9].mxu0  ;;  %v533_v19 = vpop.f32.mrb[6].mxu1 }
 0x66e   :  { %v442_v20 = vpop.f32.mrb[10].mxu0  ;;  %v1888_v21 = vpop.f32.mrb[7].mxu1  ;;  %v538_v26 = vadd.f32 %v1747_v25, %v533_v19  ;;  %v539_v32 = vmul.f32 0.5, %v537_v22 }
 0x66f   :  { %2059 = vtanh.f32 %v440_v17  ;;  %v1880_v23 = vpop.f32.mrb[11].mxu0  ;;  %v443_v24 = vadd.f32 %v442_v20, %v2382_v60  ;;  %v446_v31 = vmul.f32 0.5, %v440_v17 }
 0x670   :  { %2061 = vtanh.f32 %v537_v22  ;;  %v540_v35 = vmul.f32 0.5, %v538_v26 }
 0x671   :  { %2063 = vtanh.f32 %v443_v24  ;;  %v447_v34 = vmul.f32 0.5, %v443_v24 }
 0x672   :  { %2065 = vtanh.f32 %v538_v26 }
 0x673   :  { %2067 = vtanh.f32 %v446_v31 }
 0x674   :  { %2069 = vtanh.f32 %v539_v32 }
 0x675   :  { %2071 = vtanh.f32 %v447_v34 }
 0x676   :  { %2073 = vtanh.f32 %v540_v35 }
 0x679   :  { %v2060_v27 = vpop.eup %2059 }
 0x67a   :  { %460 = vrot.lane.b32.xlu0 %v2060_v27, %s2227_s30  ;;  %v2062_v28 = vpop.eup %2061 }
 0x67b   :  { %v2064_v29 = vpop.eup %2063 }
 0x67c   :  { %462 = vrot.lane.b32.xlu1 %v2064_v29, %s2227_s30  ;;  %v2066_v30 = vpop.eup %2065 }
 0x67d   :  { %v2068_v39 = vpop.eup %2067 }
 0x67e   :  { %553 = vrot.lane.b32.xlu0 %v2062_v28, %s2227_s30  ;;  %v450_v41 = vmul.f32 0.5, %v2068_v39  ;;  %v2070_v42 = vpop.eup %2069 }
 0x67f   :  { %v2072_v44 = vpop.eup %2071  ;;  %v543_v47 = vmul.f32 0.5, %v2070_v42 }
 0x680   :  { %555 = vrot.lane.b32.xlu1 %v2066_v30, %s2227_s30  ;;  %v452_v45 = vadd.f32 0.5, %v450_v41  ;;  %v451_v50 = vmul.f32 0.5, %v2072_v44  ;;  %v2074_v53 = vpop.eup %2073  ;;  %v1750_v30 = vld [vmem:[%s2834_s0 + $0x30] sm:$0xff] }
 0x681   :  { %v545_v55 = vadd.f32 0.5, %v543_v47  ;;  %v544_v59 = vmul.f32 0.5, %v2074_v53 }
 0x682   :  { %v453_v58 = vadd.f32 0.5, %v451_v50  ;;  %v456_v4 = vmul.f32 %v452_v45, %v2398_v46 }
 0x683   :  { %v546_v63 = vadd.f32 0.5, %v544_v59  ;;  %v549_v7 = vmul.f32 %v545_v55, %v2402_v51 }
 0x684   :  { %v457_v9 = vmul.f32 %v453_v58, %v2404_v54 }
 0x685   :  { %v550_v46 = vmul.f32 %v546_v63, %v2409_v57 }
 0x6ec   :  { %v461_v48 = vpop.permute.xlu0 %460 }
 0x6ed   :  { %v466_v49 = vmul.f32 %v461_v48, %v452_v45  ;;  %v1751_v48 = vld [vmem:[%s2834_s0 + $0x38] sm:$0xff] }
 0x6ee   :  { %v463_v61 = vpop.permute.xlu1 %462 }
 0x6ef   :  { %470 = vrot.lane.b32.xlu0 %v466_v49, %s2226_s25  ;;  %v467_v62 = vmul.f32 %v463_v61, %v453_v58 }
 0x6f0   :  { %v554_v56 = vpop.permute.xlu0 %553 }
 0x6f1   :  { %v559_v33 = vmul.f32 %v554_v56, %v545_v55  ;;  %472 = vrot.lane.b32.xlu1 %v467_v62, %s2226_s25 }
 0x6f2   :  { %v556_v36 = vpop.permute.xlu1 %555 }
 0x6f3   :  { %563 = vrot.lane.b32.xlu0 %v559_v33, %s2226_s25  ;;  %v560_v2 = vmul.f32 %v556_v36, %v546_v63 }
 0x6f5   :  { %565 = vrot.lane.b32.xlu1 %v560_v2, %s2226_s25 }
 0x761   :  { %v471_v5 = vpop.permute.xlu0 %470 }
 0x762   :  { %v2454_v6 = vadd.f32 %v471_v5, %v456_v4 }
 0x763   :  { %v473_v11 = vpop.permute.xlu1 %472 }
 0x764   :  { %2075 = vtanh.f32 %v2454_v6  ;;  %v2461_v12 = vadd.f32 %v473_v11, %v457_v9 }
 0x765   :  { %v564_v8 = vpop.permute.xlu0 %563 }
 0x766   :  { %v2459_v10 = vadd.f32 %v564_v8, %v549_v7 }
 0x767   :  { %v566_v13 = vpop.permute.xlu1 %565 }
 0x768   :  { %2077 = vtanh.f32 %v2459_v10  ;;  %v2466_v14 = vadd.f32 %v566_v13, %v550_v46 }
 0x769   :  { %2079 = vtanh.f32 %v2461_v12 }
 0x76a   :  { %2081 = vtanh.f32 %v2466_v14 }
 0x76e   :  { %v2076_v15 = vpop.eup %2075 }
 0x76f   :  { %482 = vrot.lane.b32.xlu0 %v2076_v15, %s2227_s30 }
 0x772   :  { %v2078_v51 = vpop.eup %2077 }
 0x773   :  { %575 = vrot.lane.b32.xlu0 %v2078_v51, %s2227_s30  ;;  %v2080_v54 = vpop.eup %2079 }
 0x774   :  { %484 = vrot.lane.b32.xlu1 %v2080_v54, %s2227_s30  ;;  %v2082_v16 = vpop.eup %2081 }
 0x778   :  { %577 = vrot.lane.b32.xlu1 %v2082_v16, %s2227_s30 }
 0x7e1   :  { %v483_v17 = vpop.permute.xlu0 %482 }
 0x7e2   :  { %v488_v57 = vmul.f32 %v483_v17, %v452_v45 }
 0x7e5   :  { %v576_v20 = vpop.permute.xlu0 %575 }
 0x7e6   :  { %v485_v18 = vpop.permute.xlu1 %484  ;;  %v581_v23 = vmul.f32 %v576_v20, %v545_v55 }
 0x7e7   :  { %v489_v19 = vmul.f32 %v485_v18, %v453_v58 }
 0x7e9   :  { %v490_v21 = vpack.c.bf16 %v489_v19, %v488_v57 }
 0x7ea   :  { %v578_v22 = vpop.permute.xlu1 %577 }
 0x7eb   :  { %v582_v24 = vmul.f32 %v578_v22, %v546_v63  ;;  %588 = vrot.lane.b32.xlu1 %v490_v21, %s2227_s30 }
 0x7ed   :  { %v583_v25 = vpack.c.bf16 %v582_v24, %v581_v23 }
 0x7ef   :  { %585 = vrot.lane.b32.xlu0 %v583_v25, %s2226_s25 }
 0x85d   :  { %v589_v26 = vpop.permute.xlu1 %588 }
 0x861   :  { %v586_v27 = vpop.permute.xlu0 %585 }
 0x862   :  { %v592_v28 = vsel %vm28_vm0, %v586_v27, %v589_v26  ;;  %1906 = vmatmul.mubr.msk.bf16.vlgmr.msra.gmra.mrb[12].mxu0 %vm28_vm0, %v586_v27 }
 0x863   :  { %1898 = vmatmul.mubr.msk.bf16.vlgmr.msra.gmra.mrb[8].mxu1 %vm204_vm2, %v592_v28  ;;  %1910 = vmatpush3.bf16.msra.mxu0 %v2322_v37 }
 0x864   :  { %1911 = vmatprep.subr.bf16.mxu0 %v2223_v0  ;;  %1922 = vmatpush3.bf16.msra.mxu1 %v2268_v1 }
 0x865   :  { %1923 = vmatprep.subr.bf16.mxu1 %v2223_v0  ;;  %1925 = vmatprep.mubr.msk.bf16.mxu1 %vm2224_vm1, %v2223_v0 }
 0x866   :  { %1917 = vmatprep.mubr.msk.bf16.mxu0 %vm2224_vm1, %v2223_v0 }
 0x867   :  { %1912 = vmatpush3.bf16.msra.mxu0 %v2328_v38 }
 0x868   :  { %1913 = vmatprep.subr.bf16.mxu0 %v2223_v0  ;;  %1924 = vmatpush3.bf16.msra.mxu1 %v2289_v3 }
 0x869   :  { %1929 = vmatprep.subr.bf16.mxu1 %v2223_v0 }
 0x86b   :  { %1914 = vmatpush3.bf16.msra.mxu0 %v2336_v40 }
 0x86c   :  { %1915 = vmatprep.subr.bf16.mxu0 %v2223_v0 }
 0x86f   :  { %1916 = vmatpush3.bf16.msra.mxu0 %v2344_v43 }
 0x870   :  { %1941 = vmatprep.subr.bf16.mxu0 %v2223_v0 }
 0x935   :  { %v720_v29 = vpop.f32.mrb[12].mxu0 }
 0x936   :  { %v629_v31 = vpop.f32.mrb[8].mxu1  ;;  %v1907_v32 = vpop.f32.mrb[13].mxu0  ;;  %v727_v44 = vadd.f32 %v1750_v30, %v720_v29 }
 0x937   :  { %v630_v34 = vadd.f32 %v629_v31, %v2373_v52  ;;  %v1899_v35 = vpop.f32.mrb[9].mxu1  ;;  %v723_v39 = vpop.f32.mrb[14].mxu0 }
 0x938   :  { %v632_v41 = vpop.f32.mrb[10].mxu1  ;;  %v1908_v42 = vpop.f32.mrb[15].mxu0  ;;  %v728_v49 = vadd.f32 %v1751_v48, %v723_v39  ;;  %v729_v33 = vmul.f32 0.5, %v727_v44 }
 0x939   :  { %2083 = vtanh.f32 %v630_v34  ;;  %v1900_v45 = vpop.f32.mrb[11].mxu1  ;;  %v633_v47 = vadd.f32 %v632_v41, %v2382_v60  ;;  %v636_v58 = vmul.f32 0.5, %v630_v34 }
 0x93a   :  { %2085 = vtanh.f32 %v727_v44  ;;  %v730_v61 = vmul.f32 0.5, %v728_v49 }
 0x93b   :  { %2087 = vtanh.f32 %v633_v47  ;;  %v637_v59 = vmul.f32 0.5, %v633_v47 }
 0x93c   :  { %2089 = vtanh.f32 %v728_v49 }
 0x93d   :  { %2091 = vtanh.f32 %v636_v58 }
 0x93e   :  { %2093 = vtanh.f32 %v729_v33 }
 0x93f   :  { %2095 = vtanh.f32 %v637_v59 }
 0x940   :  { %2097 = vtanh.f32 %v730_v61 }
 0x943   :  { %v2084_v50 = vpop.eup %2083 }
 0x944   :  { %650 = vrot.lane.b32.xlu0 %v2084_v50, %s2227_s30  ;;  %v2086_v53 = vpop.eup %2085 }
 0x945   :  { %v2088_v55 = vpop.eup %2087 }
 0x946   :  { %652 = vrot.lane.b32.xlu1 %v2088_v55, %s2227_s30  ;;  %v2090_v56 = vpop.eup %2089  ;;  %v1754_v55 = vld [vmem:[%s2834_s0 + $0x40] sm:$0xff] }
 0x947   :  { %v2092_v62 = vpop.eup %2091 }
 0x948   :  { %743 = vrot.lane.b32.xlu0 %v2086_v53, %s2227_s30  ;;  %v640_v63 = vmul.f32 0.5, %v2092_v62  ;;  %v2094_v36 = vpop.eup %2093 }
 0x949   :  { %v2096_v2 = vpop.eup %2095  ;;  %v733_v5 = vmul.f32 0.5, %v2094_v36 }
 0x94a   :  { %745 = vrot.lane.b32.xlu1 %v2090_v56, %s2227_s30  ;;  %v642_v4 = vadd.f32 0.5, %v640_v63  ;;  %v641_v9 = vmul.f32 0.5, %v2096_v2  ;;  %v2098_v11 = vpop.eup %2097 }
 0x94b   :  { %v735_v46 = vadd.f32 0.5, %v733_v5  ;;  %v734_v54 = vmul.f32 0.5, %v2098_v11 }
 0x94c   :  { %v643_v15 = vadd.f32 0.5, %v641_v9  ;;  %v646_v20 = vmul.f32 %v642_v4, %v2454_v6 }
 0x94d   :  { %v736_v18 = vadd.f32 0.5, %v734_v54  ;;  %v739_v23 = vmul.f32 %v735_v46, %v2459_v10 }
 0x94e   :  { %v647_v25 = vmul.f32 %v643_v15, %v2461_v12 }
 0x94f   :  { %v740_v6 = vmul.f32 %v736_v18, %v2466_v14 }
 0x9b6   :  { %v651_v7 = vpop.permute.xlu0 %650 }
 0x9b7   :  { %v656_v8 = vmul.f32 %v651_v7, %v642_v4 }
 0x9b8   :  { %v653_v16 = vpop.permute.xlu1 %652 }
 0x9b9   :  { %660 = vrot.lane.b32.xlu0 %v656_v8, %s2226_s25  ;;  %v657_v17 = vmul.f32 %v653_v16, %v643_v15 }
 0x9ba   :  { %v744_v13 = vpop.permute.xlu0 %743 }
 0x9bb   :  { %v749_v51 = vmul.f32 %v744_v13, %v735_v46  ;;  %662 = vrot.lane.b32.xlu1 %v657_v17, %s2226_s25 }
 0x9bc   :  { %v746_v57 = vpop.permute.xlu1 %745 }
 0x9bd   :  { %753 = vrot.lane.b32.xlu0 %v749_v51, %s2226_s25  ;;  %v750_v19 = vmul.f32 %v746_v57, %v736_v18 }
 0x9bf   :  { %755 = vrot.lane.b32.xlu1 %v750_v19, %s2226_s25 }
 0xa2b   :  { %v661_v21 = vpop.permute.xlu0 %660 }
 0xa2c   :  { %v2511_v22 = vadd.f32 %v661_v21, %v646_v20 }
 0xa2d   :  { %v663_v27 = vpop.permute.xlu1 %662 }
 0xa2e   :  { %2099 = vtanh.f32 %v2511_v22  ;;  %v2518_v28 = vadd.f32 %v663_v27, %v647_v25 }
 0xa2f   :  { %v754_v24 = vpop.permute.xlu0 %753 }
 0xa30   :  { %v2516_v26 = vadd.f32 %v754_v24, %v739_v23 }
 0xa31   :  { %v756_v29 = vpop.permute.xlu1 %755 }
 0xa32   :  { %2101 = vtanh.f32 %v2516_v26  ;;  %v2523_v30 = vadd.f32 %v756_v29, %v740_v6 }
 0xa33   :  { %2103 = vtanh.f32 %v2518_v28 }
 0xa34   :  { %2105 = vtanh.f32 %v2523_v30 }
 0xa38   :  { %v2100_v31 = vpop.eup %2099 }
 0xa39   :  { %672 = vrot.lane.b32.xlu0 %v2100_v31, %s2227_s30 }
 0xa3c   :  { %v2102_v10 = vpop.eup %2101 }
 0xa3d   :  { %765 = vrot.lane.b32.xlu0 %v2102_v10, %s2227_s30  ;;  %v2104_v12 = vpop.eup %2103 }
 0xa3e   :  { %674 = vrot.lane.b32.xlu1 %v2104_v12, %s2227_s30  ;;  %v2106_v32 = vpop.eup %2105 }
 0xa42   :  { %767 = vrot.lane.b32.xlu1 %v2106_v32, %s2227_s30 }
 0xaab   :  { %v673_v34 = vpop.permute.xlu0 %672 }
 0xaac   :  { %v678_v14 = vmul.f32 %v673_v34, %v642_v4  ;;  %v1755_v4 = vld [vmem:[%s2834_s0 + $0x48] sm:$0xff] }
 0xaaf   :  { %v766_v41 = vpop.permute.xlu0 %765 }
 0xab0   :  { %v675_v35 = vpop.permute.xlu1 %674  ;;  %v771_v45 = vmul.f32 %v766_v41, %v735_v46 }
 0xab1   :  { %v679_v39 = vmul.f32 %v675_v35, %v643_v15 }
 0xab3   :  { %v680_v42 = vpack.c.bf16 %v679_v39, %v678_v14 }
 0xab4   :  { %v768_v44 = vpop.permute.xlu1 %767 }
 0xab5   :  { %v772_v47 = vmul.f32 %v768_v44, %v736_v18  ;;  %778 = vrot.lane.b32.xlu1 %v680_v42, %s2227_s30 }
 0xab7   :  { %v773_v48 = vpack.c.bf16 %v772_v47, %v771_v45 }
 0xab9   :  { %775 = vrot.lane.b32.xlu0 %v773_v48, %s2226_s25 }
 0xb27   :  { %v779_v49 = vpop.permute.xlu1 %778 }
 0xb2b   :  { %v776_v50 = vpop.permute.xlu0 %775 }
 0xb2c   :  { %v782_v53 = vsel %vm28_vm0, %v776_v50, %v779_v49  ;;  %1926 = vmatmul.mubr.msk.bf16.vlgmr.msra.gmra.mrb[12].mxu1 %vm28_vm0, %v776_v50 }
 0xb2d   :  { %1918 = vmatmul.mubr.msk.bf16.vlgmr.msra.gmra.mrb[16].mxu0 %vm204_vm2, %v782_v53  ;;  %1930 = vmatpush3.bf16.msra.mxu1 %v2322_v37 }
 0xb2e   :  { %1931 = vmatprep.subr.bf16.mxu1 %v2223_v0  ;;  %1942 = vmatpush3.bf16.msra.mxu0 %v2268_v1 }
 0xb2f   :  { %1943 = vmatprep.subr.bf16.mxu0 %v2223_v0  ;;  %1945 = vmatprep.mubr.msk.bf16.mxu0 %vm2224_vm1, %v2223_v0 }
 0xb30   :  { %1937 = vmatprep.mubr.msk.bf16.mxu1 %vm2224_vm1, %v2223_v0 }
 0xb31   :  { %1932 = vmatpush3.bf16.msra.mxu1 %v2328_v38 }
 0xb32   :  { %1933 = vmatprep.subr.bf16.mxu1 %v2223_v0  ;;  %1944 = vmatpush3.bf16.msra.mxu0 %v2289_v3 }
 0xb33   :  { %1949 = vmatprep.subr.bf16.mxu0 %v2223_v0 }
 0xb35   :  { %1934 = vmatpush3.bf16.msra.mxu1 %v2336_v40 }
 0xb36   :  { %1935 = vmatprep.subr.bf16.mxu1 %v2223_v0 }
 0xb39   :  { %1936 = vmatpush3.bf16.msra.mxu1 %v2344_v43 }
 0xb3a   :  { %1961 = vmatprep.subr.bf16.mxu1 %v2223_v0 }
 0xbff   :  { %v910_v1 = vpop.f32.mrb[12].mxu1 }
 0xc00   :  { %v819_v56 = vpop.f32.mrb[16].mxu0  ;;  %v1927_v58 = vpop.f32.mrb[13].mxu1  ;;  %v917_v63 = vadd.f32 %v1754_v55, %v910_v1 }
 0xc01   :  { %v820_v33 = vadd.f32 %v819_v56, %v2373_v52  ;;  %v1919_v3 = vpop.f32.mrb[17].mxu0  ;;  %v913_v59 = vpop.f32.mrb[14].mxu1 }
 0xc02   :  { %v822_v61 = vpop.f32.mrb[18].mxu0  ;;  %v1928_v62 = vpop.f32.mrb[15].mxu1  ;;  %v918_v5 = vadd.f32 %v1755_v4, %v913_v59  ;;  %v919_v13 = vmul.f32 0.5, %v917_v63 }
 0xc03   :  { %2107 = vtanh.f32 %v820_v33  ;;  %v1920_v36 = vpop.f32.mrb[19].mxu0  ;;  %v823_v2 = vadd.f32 %v822_v61, %v2382_v60  ;;  %v826_v46 = vmul.f32 0.5, %v820_v33 }
 0xc04   :  { %2109 = vtanh.f32 %v917_v63  ;;  %v920_v51 = vmul.f32 0.5, %v918_v5 }
 0xc05   :  { %2111 = vtanh.f32 %v823_v2  ;;  %v827_v15 = vmul.f32 0.5, %v823_v2 }
 0xc06   :  { %2113 = vtanh.f32 %v918_v5 }
 0xc07   :  { %2115 = vtanh.f32 %v826_v46 }
 0xc08   :  { %2117 = vtanh.f32 %v919_v13 }
 0xc09   :  { %2119 = vtanh.f32 %v827_v15 }
 0xc0a   :  { %2121 = vtanh.f32 %v920_v51 }
 0xc0d   :  { %v2108_v7 = vpop.eup %2107 }
 0xc0e   :  { %840 = vrot.lane.b32.xlu0 %v2108_v7, %s2227_s30  ;;  %v2110_v8 = vpop.eup %2109  ;;  %v2597_v7 = vld [vmem:[%s2833_s1] sm:$0xff]  }
 0xc0f   :  { %v2112_v9 = vpop.eup %2111 }
 0xc10   :  { %842 = vrot.lane.b32.xlu1 %v2112_v9, %s2227_s30  ;;  %v2114_v11 = vpop.eup %2113 }
 0xc11   :  { %v2116_v54 = vpop.eup %2115 }
 0xc12   :  { %933 = vrot.lane.b32.xlu0 %v2110_v8, %s2227_s30  ;;  %v830_v16 = vmul.f32 0.5, %v2116_v54  ;;  %v2118_v17 = vpop.eup %2117  ;;  %v1758_v8 = vld [vmem:[%s2834_s0 + $0x50] sm:$0xff] }
 0xc13   :  { %v2120_v18 = vpop.eup %2119  ;;  %v923_v19 = vmul.f32 0.5, %v2118_v17  ;;  %v1759_v17 = vld [vmem:[%s2834_s0 + $0x58] sm:$0xff] }
 0xc14   :  { %935 = vrot.lane.b32.xlu1 %v2114_v11, %s2227_s30  ;;  %v832_v57 = vadd.f32 0.5, %v830_v16  ;;  %v831_v23 = vmul.f32 0.5, %v2120_v18  ;;  %v2122_v24 = vpop.eup %2121 }
 0xc15   :  { %v925_v25 = vadd.f32 0.5, %v923_v19  ;;  %v924_v31 = vmul.f32 0.5, %v2122_v24 }
 0xc16   :  { %v833_v6 = vadd.f32 0.5, %v831_v23  ;;  %v836_v14 = vmul.f32 %v832_v57, %v2511_v22 }
 0xc17   :  { %v926_v32 = vadd.f32 0.5, %v924_v31  ;;  %v929_v42 = vmul.f32 %v925_v25, %v2516_v26 }
 0xc18   :  { %v837_v45 = vmul.f32 %v833_v6, %v2518_v28 }
 0xc19   :  { %v930_v22 = vmul.f32 %v926_v32, %v2523_v30 }
 0xc80   :  { %v841_v20 = vpop.permute.xlu0 %840 }
 0xc81   :  { %v846_v21 = vmul.f32 %v841_v20, %v832_v57 }
 0xc82   :  { %v843_v10 = vpop.permute.xlu1 %842 }
 0xc83   :  { %850 = vrot.lane.b32.xlu0 %v846_v21, %s2226_s25  ;;  %v847_v12 = vmul.f32 %v843_v10, %v833_v6 }
 0xc84   :  { %v934_v27 = vpop.permute.xlu0 %933 }
 0xc85   :  { %v939_v29 = vmul.f32 %v934_v27, %v925_v25  ;;  %852 = vrot.lane.b32.xlu1 %v847_v12, %s2226_s25 }
 0xc86   :  { %v936_v34 = vpop.permute.xlu1 %935 }
 0xc87   :  { %943 = vrot.lane.b32.xlu0 %v939_v29, %s2226_s25  ;;  %v940_v35 = vmul.f32 %v936_v34, %v926_v32 }
 0xc89   :  { %945 = vrot.lane.b32.xlu1 %v940_v35, %s2226_s25 }
 0xcf5   :  { %v851_v39 = vpop.permute.xlu0 %850 }
 0xcf6   :  { %v2568_v41 = vadd.f32 %v851_v39, %v836_v14 }
 0xcf7   :  { %v853_v48 = vpop.permute.xlu1 %852 }
 0xcf8   :  { %2123 = vtanh.f32 %v2568_v41  ;;  %v2575_v49 = vadd.f32 %v853_v48, %v837_v45 }
 0xcf9   :  { %v944_v44 = vpop.permute.xlu0 %943 }
 0xcfa   :  { %v2573_v47 = vadd.f32 %v944_v44, %v929_v42 }
 0xcfb   :  { %v946_v50 = vpop.permute.xlu1 %945 }
 0xcfc   :  { %2125 = vtanh.f32 %v2573_v47  ;;  %v2580_v53 = vadd.f32 %v946_v50, %v930_v22 }
 0xcfd   :  { %2127 = vtanh.f32 %v2575_v49 }
 0xcfe   :  { %2129 = vtanh.f32 %v2580_v53 }
 0xd02   :  { %v2124_v1 = vpop.eup %2123 }
 0xd03   :  { %862 = vrot.lane.b32.xlu0 %v2124_v1, %s2227_s30 }
 0xd06   :  { %v2126_v26 = vpop.eup %2125 }
 0xd07   :  { %955 = vrot.lane.b32.xlu0 %v2126_v26, %s2227_s30  ;;  %v2128_v28 = vpop.eup %2127 }
 0xd08   :  { %864 = vrot.lane.b32.xlu1 %v2128_v28, %s2227_s30  ;;  %v2130_v55 = vpop.eup %2129 }
 0xd0c   :  { %957 = vrot.lane.b32.xlu1 %v2130_v55, %s2227_s30 }
 0xd75   :  { %v863_v56 = vpop.permute.xlu0 %862 }
 0xd76   :  { %v868_v30 = vmul.f32 %v863_v56, %v832_v57 }
 0xd79   :  { %v956_v3 = vpop.permute.xlu0 %955 }
 0xd7a   :  { %v865_v58 = vpop.permute.xlu1 %864  ;;  %v961_v62 = vmul.f32 %v956_v3, %v925_v25 }
 0xd7b   :  { %v869_v33 = vmul.f32 %v865_v58, %v833_v6 }
 0xd7d   :  { %v870_v59 = vpack.c.bf16 %v869_v33, %v868_v30 }
 0xd7e   :  { %v958_v61 = vpop.permute.xlu1 %957 }
 0xd7f   :  { %v962_v63 = vmul.f32 %v958_v61, %v926_v32  ;;  %968 = vrot.lane.b32.xlu1 %v870_v59, %s2227_s30 }
 0xd81   :  { %v963_v36 = vpack.c.bf16 %v962_v63, %v961_v62 }
 0xd83   :  { %965 = vrot.lane.b32.xlu0 %v963_v36, %s2226_s25 }
 0xdf1   :  { %v969_v2 = vpop.permute.xlu1 %968 }
 0xdf5   :  { %v966_v4 = vpop.permute.xlu0 %965 }
 0xdf6   :  { %v972_v5 = vsel %vm28_vm0, %v966_v4, %v969_v2  ;;  %1946 = vmatmul.mubr.msk.bf16.vlgmr.msra.gmra.mrb[20].mxu0 %vm28_vm0, %v966_v4 }
 0xdf7   :  { %1938 = vmatmul.mubr.msk.bf16.vlgmr.msra.gmra.mrb[16].mxu1 %vm204_vm2, %v972_v5  ;;  %1950 = vmatpush3.bf16.msra.mxu0 %v2322_v37  ;;  %v2610_v37 = vld [vmem:[%s2833_s1 + $0x8] sm:$0xff]   ;;  %s2228_s1 = smov 96  }
 0xdf8   :  { %1951 = vmatprep.subr.bf16.mxu0 %v2223_v0  ;;  %1962 = vmatpush3.bf16.msra.mxu1 %v2597_v7 }
 0xdf9   :  { %1963 = vmatprep.subr.bf16.mxu1 %v2223_v0  ;;  %1965 = vmatprep.mubr.msk.bf16.mxu1 %vm2224_vm1, %v2223_v0 }
 0xdfa   :  { %1957 = vmatprep.mubr.msk.bf16.mxu0 %vm2224_vm1, %v2223_v0 }
 0xdfb   :  { %1952 = vmatpush3.bf16.msra.mxu0 %v2328_v38 }
 0xdfc   :  { %1953 = vmatprep.subr.bf16.mxu0 %v2223_v0  ;;  %1964 = vmatpush3.bf16.msra.mxu1 %v2610_v37 }
 0xdfd   :  { %1969 = vmatprep.subr.bf16.mxu1 %v2223_v0 }
 0xdff   :  { %1954 = vmatpush3.bf16.msra.mxu0 %v2336_v40 }
 0xe00   :  { %1955 = vmatprep.subr.bf16.mxu0 %v2223_v0 }
 0xe03   :  { %1956 = vmatpush3.bf16.msra.mxu0 %v2344_v43 }
 0xe04   :  { %1981 = vmatprep.subr.bf16.mxu0 %v2223_v0 }
 0xec9   :  { %v1100_v38 = vpop.f32.mrb[20].mxu0 }
 0xeca   :  { %v1009_v9 = vpop.f32.mrb[16].mxu1  ;;  %v1947_v11 = vpop.f32.mrb[21].mxu0  ;;  %v1107_v40 = vadd.f32 %v1758_v8, %v1100_v38 }
 0xecb   :  { %v1010_v46 = vadd.f32 %v1009_v9, %v2373_v52  ;;  %v1939_v13 = vpop.f32.mrb[17].mxu1  ;;  %v1103_v15 = vpop.f32.mrb[22].mxu0 }
 0xecc   :  { %v1012_v51 = vpop.f32.mrb[18].mxu1  ;;  %v1948_v54 = vpop.f32.mrb[23].mxu0  ;;  %v1108_v18 = vadd.f32 %v1759_v17, %v1103_v15  ;;  %v1109_v21 = vmul.f32 0.5, %v1107_v40  ;;  %v2691_v17 = vld [vmem:[%s2835_s2 + $0x18] sm:$0xff]  }
 0xecd   :  { %2131 = vtanh.f32 %v1010_v46  ;;  %v1940_v16 = vpop.f32.mrb[19].mxu1  ;;  %v1013_v43 = vadd.f32 %v1012_v51, %v2382_v60  ;;  %v1016_v60 = vmul.f32 0.5, %v1010_v46 }
 0xece   :  { %2133 = vtanh.f32 %v1107_v40  ;;  %v1110_v24 = vmul.f32 0.5, %v1108_v18  ;;  %v2662_v16 = vld [vmem:[%s2835_s2] sm:$0xff]  }
 0xecf   :  { %2135 = vtanh.f32 %v1013_v43  ;;  %v1017_v23 = vmul.f32 0.5, %v1013_v43  ;;  %v2675_v43 = vld [vmem:[%s2835_s2 + $0x8] sm:$0xff]  }
 0xed0   :  { %2137 = vtanh.f32 %v1108_v18  ;;  %v1762_v18 = vld [vmem:[%s2834_s0 + $0x60] sm:$0xff] }
 0xed1   :  { %2139 = vtanh.f32 %v1016_v60 }
 0xed2   :  { %2141 = vtanh.f32 %v1109_v21 }
 0xed3   :  { %2143 = vtanh.f32 %v1017_v23 }
 0xed4   :  { %2145 = vtanh.f32 %v1110_v24 }
 0xed7   :  { %v2132_v57 = vpop.eup %2131 }
 0xed8   :  { %1030 = vrot.lane.b32.xlu0 %v2132_v57, %s2227_s30  ;;  %v2134_v52 = vpop.eup %2133 }
 0xed9   :  { %v2136_v19 = vpop.eup %2135 }
 0xeda   :  { %1032 = vrot.lane.b32.xlu1 %v2136_v19, %s2227_s30  ;;  %v2138_v20 = vpop.eup %2137  ;;  %v2701_v19 = vld [vmem:[%s2836_s3] sm:$0xff] }
 0xedb   :  { %v2140_v25 = vpop.eup %2139 }
 0xedc   :  { %1123 = vrot.lane.b32.xlu0 %v2134_v52, %s2227_s30  ;;  %v1020_v27 = vmul.f32 0.5, %v2140_v25  ;;  %v2142_v6 = vpop.eup %2141 }
 0xedd   :  { %v2144_v29 = vpop.eup %2143  ;;  %v1113_v10 = vmul.f32 0.5, %v2142_v6  ;;  %v2707_v6 = vld [vmem:[%s2836_s3 + $0x8] sm:$0xff] }
 0xede   :  { %1125 = vrot.lane.b32.xlu1 %v2138_v20, %s2227_s30  ;;  %v1022_v31 = vadd.f32 0.5, %v1020_v27  ;;  %v1021_v34 = vmul.f32 0.5, %v2144_v29  ;;  %v2146_v35 = vpop.eup %2145 }
 0xedf   :  { %v1115_v14 = vadd.f32 0.5, %v1113_v10  ;;  %v1114_v45 = vmul.f32 0.5, %v2146_v35 }
 0xee0   :  { %v1023_v42 = vadd.f32 0.5, %v1021_v34  ;;  %v1026_v28 = vmul.f32 %v1022_v31, %v2568_v41 }
 0xee1   :  { %v1116_v50 = vadd.f32 0.5, %v1114_v45  ;;  %v1119_v58 = vmul.f32 %v1115_v14, %v2573_v47 }
 0xee2   :  { %v1027_v33 = vmul.f32 %v1023_v42, %v2575_v49 }
 0xee3   :  { %v1120_v41 = vmul.f32 %v1116_v50, %v2580_v53 }
 0xf4a   :  { %v1031_v12 = vpop.permute.xlu0 %1030 }
 0xf4b   :  { %v1036_v32 = vmul.f32 %v1031_v12, %v1022_v31 }
 0xf4c   :  { %v1033_v48 = vpop.permute.xlu1 %1032 }
 0xf4d   :  { %1040 = vrot.lane.b32.xlu0 %v1036_v32, %s2226_s25  ;;  %v1037_v22 = vmul.f32 %v1033_v48, %v1023_v42 }
 0xf4e   :  { %v1124_v39 = vpop.permute.xlu0 %1123 }
 0xf4f   :  { %v1129_v44 = vmul.f32 %v1124_v39, %v1115_v14  ;;  %1042 = vrot.lane.b32.xlu1 %v1037_v22, %s2226_s25 }
 0xf50   :  { %v1126_v1 = vpop.permute.xlu1 %1125 }
 0xf51   :  { %1133 = vrot.lane.b32.xlu0 %v1129_v44, %s2226_s25  ;;  %v1130_v26 = vmul.f32 %v1126_v1, %v1116_v50 }
 0xf53   :  { %1135 = vrot.lane.b32.xlu1 %v1130_v26, %s2226_s25 }
 0xfbf   :  { %v1041_v55 = vpop.permute.xlu0 %1040 }
 0xfc0   :  { %v2635_v56 = vadd.f32 %v1041_v55, %v1026_v28 }
 0xfc1   :  { %v1043_v59 = vpop.permute.xlu1 %1042 }
 0xfc2   :  { %2147 = vtanh.f32 %v2635_v56  ;;  %v2642_v61 = vadd.f32 %v1043_v59, %v1027_v33 }
 0xfc3   :  { %v1134_v30 = vpop.permute.xlu0 %1133 }
 0xfc4   :  { %v2640_v3 = vadd.f32 %v1134_v30, %v1119_v58 }
 0xfc5   :  { %v1136_v62 = vpop.permute.xlu1 %1135 }
 0xfc6   :  { %2149 = vtanh.f32 %v2640_v3  ;;  %v2647_v63 = vadd.f32 %v1136_v62, %v1120_v41 }
 0xfc7   :  { %2151 = vtanh.f32 %v2642_v61 }
 0xfc8   :  { %2153 = vtanh.f32 %v2647_v63 }
 0xfcc   :  { %v2148_v36 = vpop.eup %2147 }
 0xfcd   :  { %1052 = vrot.lane.b32.xlu0 %v2148_v36, %s2227_s30 }
 0xfd0   :  { %v2150_v47 = vpop.eup %2149 }
 0xfd1   :  { %1145 = vrot.lane.b32.xlu0 %v2150_v47, %s2227_s30  ;;  %v2152_v49 = vpop.eup %2151 }
 0xfd2   :  { %1054 = vrot.lane.b32.xlu1 %v2152_v49, %s2227_s30  ;;  %v2154_v2 = vpop.eup %2153 }
 0xfd6   :  { %1147 = vrot.lane.b32.xlu1 %v2154_v2, %s2227_s30 }
0x103f   :  { %v1053_v4 = vpop.permute.xlu0 %1052 }
0x1040   :  { %v1058_v53 = vmul.f32 %v1053_v4, %v1022_v31  ;;  %v1763_v31 = vld [vmem:[%s2834_s0 + $0x68] sm:$0xff] }
0x1043   :  { %v1146_v8 = vpop.permute.xlu0 %1145 }
0x1044   :  { %v1055_v5 = vpop.permute.xlu1 %1054  ;;  %v1151_v46 = vmul.f32 %v1146_v8, %v1115_v14 }
0x1045   :  { %v1059_v38 = vmul.f32 %v1055_v5, %v1023_v42 }
0x1047   :  { %v1060_v9 = vpack.c.bf16 %v1059_v38, %v1058_v53 }
0x1048   :  { %v1148_v11 = vpop.permute.xlu1 %1147 }
0x1049   :  { %v1152_v13 = vmul.f32 %v1148_v11, %v1116_v50  ;;  %1158 = vrot.lane.b32.xlu1 %v1060_v9, %s2227_s30 }
0x104b   :  { %v1153_v15 = vpack.c.bf16 %v1152_v13, %v1151_v46 }
0x104d   :  { %1155 = vrot.lane.b32.xlu0 %v1153_v15, %s2226_s25 }
0x10bb   :  { %v1159_v51 = vpop.permute.xlu1 %1158 }
0x10bf   :  { %v1156_v54 = vpop.permute.xlu0 %1155 }
0x10c0   :  { %v1162_v40 = vsel %vm28_vm0, %v1156_v54, %v1159_v51  ;;  %1966 = vmatmul.mubr.msk.bf16.vlgmr.msra.gmra.mrb[20].mxu1 %vm28_vm0, %v1156_v54 }
0x10c1   :  { %1958 = vmatmul.mubr.msk.bf16.vlgmr.msra.gmra.mrb[24].mxu0 %vm204_vm2, %v1162_v40  ;;  %1970 = vmatpush3.bf16.msra.mxu1 %v2662_v16 }
0x10c2   :  { %1971 = vmatprep.subr.bf16.mxu1 %v2223_v0  ;;  %1982 = vmatpush3.bf16.msra.mxu0 %v2597_v7  ;;  %v2684_v7 = vld [vmem:[%s2835_s2 + $0x10] sm:$0xff]  }
0x10c3   :  { %1983 = vmatprep.subr.bf16.mxu0 %v2223_v0  ;;  %1985 = vmatprep.mubr.msk.bf16.mxu0 %vm2224_vm1, %v2223_v0 }
0x10c4   :  { %1977 = vmatprep.mubr.msk.bf16.mxu1 %vm2224_vm1, %v2223_v0 }
0x10c5   :  { %1972 = vmatpush3.bf16.msra.mxu1 %v2675_v43 }
0x10c6   :  { %1973 = vmatprep.subr.bf16.mxu1 %v2223_v0  ;;  %1984 = vmatpush3.bf16.msra.mxu0 %v2610_v37 }
0x10c7   :  { %1989 = vmatprep.subr.bf16.mxu0 %v2223_v0 }
0x10c9   :  { %1974 = vmatpush3.bf16.msra.mxu1 %v2684_v7 }
0x10ca   :  { %1975 = vmatprep.subr.bf16.mxu1 %v2223_v0 }
0x10cd   :  { %1976 = vmatpush3.bf16.msra.mxu1 %v2691_v17 }
0x10ce   :  { %2001 = vmatprep.subr.bf16.mxu1 %v2223_v0 }
0x1193   :  { %v1290_v37 = vpop.f32.mrb[20].mxu1 }
0x1194   :  { %v1199_v57 = vpop.f32.mrb[24].mxu0  ;;  %v1967_v52 = vpop.f32.mrb[21].mxu1  ;;  %v1297_v25 = vadd.f32 %v1762_v18, %v1290_v37 }
0x1195   :  { %v1200_v20 = vadd.f32 %v2701_v19, %v1199_v57  ;;  %v1959_v60 = vpop.f32.mrb[25].mxu0  ;;  %v1293_v21 = vpop.f32.mrb[22].mxu1 }
0x1196   :  { %v1202_v23 = vpop.f32.mrb[26].mxu0  ;;  %v1968_v24 = vpop.f32.mrb[23].mxu1  ;;  %v1298_v10 = vadd.f32 %v1763_v31, %v1293_v21  ;;  %v1299_v39 = vmul.f32 0.5, %v1297_v25 }
0x1197   :  { %2155 = vtanh.f32 %v1200_v20  ;;  %v1960_v27 = vpop.f32.mrb[27].mxu0  ;;  %v1203_v29 = vadd.f32 %v2707_v6, %v1202_v23  ;;  %v1206_v14 = vmul.f32 0.5, %v1200_v20 }
0x1198   :  { %2157 = vtanh.f32 %v1297_v25  ;;  %v1300_v44 = vmul.f32 0.5, %v1298_v10 }
0x1199   :  { %2159 = vtanh.f32 %v1203_v29  ;;  %v1207_v42 = vmul.f32 0.5, %v1203_v29 }
0x119a   :  { %2161 = vtanh.f32 %v1298_v10 }
0x119b   :  { %2163 = vtanh.f32 %v1206_v14 }
0x119c   :  { %2165 = vtanh.f32 %v1299_v39 }
0x119d   :  { %2167 = vtanh.f32 %v1207_v42 }
0x119e   :  { %2169 = vtanh.f32 %v1300_v44 }
0x11a1   :  { %v2156_v12 = vpop.eup %2155 }
0x11a2   :  { %1220 = vrot.lane.b32.xlu0 %v2156_v12, %s2227_s30  ;;  %v2158_v32 = vpop.eup %2157 }
0x11a3   :  { %v2160_v34 = vpop.eup %2159 }
0x11a4   :  { %1222 = vrot.lane.b32.xlu1 %v2160_v34, %s2227_s30  ;;  %v2162_v35 = vpop.eup %2161 }
0x11a5   :  { %v2164_v45 = vpop.eup %2163 }
0x11a6   :  { %1313 = vrot.lane.b32.xlu0 %v2158_v32, %s2227_s30  ;;  %v1210_v48 = vmul.f32 0.5, %v2164_v45  ;;  %v2166_v22 = vpop.eup %2165 }
0x11a7   :  { %v2168_v50 = vpop.eup %2167  ;;  %v1303_v26 = vmul.f32 0.5, %v2166_v22 }
0x11a8   :  { %1315 = vrot.lane.b32.xlu1 %v2162_v35, %s2227_s30  ;;  %v1212_v1 = vadd.f32 0.5, %v1210_v48  ;;  %v1211_v58 = vmul.f32 0.5, %v2168_v50  ;;  %v2170_v30 = vpop.eup %2169 }
0x11a9   :  { %v1305_v33 = vadd.f32 0.5, %v1303_v26  ;;  %v1304_v36 = vmul.f32 0.5, %v2170_v30 }
0x11aa   :  { %v1213_v41 = vadd.f32 0.5, %v1211_v58  ;;  %v1216_v53 = vmul.f32 %v1212_v1, %v2635_v56 }
0x11ab   :  { %v1306_v2 = vadd.f32 0.5, %v1304_v36  ;;  %v1309_v9 = vmul.f32 %v1305_v33, %v2640_v3 }
0x11ac   :  { %v1217_v46 = vmul.f32 %v1213_v41, %v2642_v61 }
0x11ad   :  { %v1310_v56 = vmul.f32 %v1306_v2, %v2647_v63 }
0x1214   :  { %v1221_v28 = vpop.permute.xlu0 %1220 }
0x1215   :  { %v1226_v55 = vmul.f32 %v1221_v28, %v1212_v1 }
0x1216   :  { %v1223_v47 = vpop.permute.xlu1 %1222 }
0x1217   :  { %1230 = vrot.lane.b32.xlu0 %v1226_v55, %s2226_s25  ;;  %v1227_v49 = vmul.f32 %v1223_v47, %v1213_v41 }
0x1218   :  { %v1314_v59 = vpop.permute.xlu0 %1313 }
0x1219   :  { %v1319_v62 = vmul.f32 %v1314_v59, %v1305_v33  ;;  %1232 = vrot.lane.b32.xlu1 %v1227_v49, %s2226_s25 }
0x121a   :  { %v1316_v4 = vpop.permute.xlu1 %1315 }
0x121b   :  { %1323 = vrot.lane.b32.xlu0 %v1319_v62, %s2226_s25  ;;  %v1320_v5 = vmul.f32 %v1316_v4, %v1306_v2 }
0x121d   :  { %1325 = vrot.lane.b32.xlu1 %v1320_v5, %s2226_s25 }
0x1289   :  { %v1231_v38 = vpop.permute.xlu0 %1230 }
0x128a   :  { %v2722_v8 = vadd.f32 %v1231_v38, %v1216_v53 }
0x128b   :  { %v1233_v15 = vpop.permute.xlu1 %1232 }
0x128c   :  { %2171 = vtanh.f32 %v2722_v8  ;;  %v2729_v51 = vadd.f32 %v1233_v15, %v1217_v46 }
0x128d   :  { %v1324_v11 = vpop.permute.xlu0 %1323 }
0x128e   :  { %v2727_v13 = vadd.f32 %v1324_v11, %v1309_v9 }
0x128f   :  { %v1326_v54 = vpop.permute.xlu1 %1325 }
0x1290   :  { %2173 = vtanh.f32 %v2727_v13  ;;  %v2734_v40 = vadd.f32 %v1326_v54, %v1310_v56 }
0x1291   :  { %2175 = vtanh.f32 %v2729_v51 }
0x1292   :  { %2177 = vtanh.f32 %v2734_v40 }
0x1296   :  { %v2172_v37 = vpop.eup %2171 }
0x1297   :  { %1242 = vrot.lane.b32.xlu0 %v2172_v37, %s2227_s30 }
0x129a   :  { %v2174_v3 = vpop.eup %2173 }
0x129b   :  { %1335 = vrot.lane.b32.xlu0 %v2174_v3, %s2227_s30  ;;  %v2176_v61 = vpop.eup %2175 }
0x129c   :  { %1244 = vrot.lane.b32.xlu1 %v2176_v61, %s2227_s30  ;;  %v2178_v18 = vpop.eup %2177 }
0x12a0   :  { %1337 = vrot.lane.b32.xlu1 %v2178_v18, %s2227_s30 }
0x1309   :  { %v1243_v57 = vpop.permute.xlu0 %1242 }
0x130a   :  { %v1248_v63 = vmul.f32 %v1243_v57, %v1212_v1 }
0x130d   :  { %v1336_v60 = vpop.permute.xlu0 %1335 }
0x130e   :  { %v1245_v52 = vpop.permute.xlu1 %1244  ;;  %v1341_v24 = vmul.f32 %v1336_v60, %v1305_v33 }
0x130f   :  { %v1249_v20 = vmul.f32 %v1245_v52, %v1213_v41 }
0x1311   :  { %v1250_v21 = vpack.c.bf16 %v1249_v20, %v1248_v63 }
0x1312   :  { %v1338_v23 = vpop.permute.xlu1 %1337 }
0x1313   :  { %v1342_v25 = vmul.f32 %v1338_v23, %v1306_v2  ;;  %1348 = vrot.lane.b32.xlu1 %v1250_v21, %s2227_s30 }
0x1315   :  { %v1343_v27 = vpack.c.bf16 %v1342_v25, %v1341_v24 }
0x1317   :  { %1345 = vrot.lane.b32.xlu0 %v1343_v27, %s2226_s25 }
0x1385   :  { %v1349_v29 = vpop.permute.xlu1 %1348 }
0x1389   :  { %v1346_v31 = vpop.permute.xlu0 %1345 }
0x138a   :  { %v1352_v10 = vsel %vm28_vm0, %v1346_v31, %v1349_v29  ;;  %1986 = vmatmul.mubr.msk.bf16.vlgmr.msra.gmra.mrb[28].mxu0 %vm28_vm0, %v1346_v31 }
0x138b   :  { %1978 = vmatmul.mubr.msk.bf16.vlgmr.msra.gmra.mrb[24].mxu1 %vm204_vm2, %v1352_v10  ;;  %1990 = vmatpush3.bf16.msra.mxu0 %v2662_v16  ;;  %v1766_v16 = vld [vmem:[%s2834_s0 + $0x70] sm:$0xff] }
0x138c   :  { %1991 = vmatprep.subr.bf16.mxu0 %v2223_v0  ;;  %1997 = vmatprep.mubr.msk.bf16.mxu0 %vm2224_vm1, %v2223_v0 }
0x138d   :  { %2005 = vmatprep.mubr.msk.bf16.mxu1 %vm2224_vm1, %v2223_v0 }
0x138f   :  { %1992 = vmatpush3.bf16.msra.mxu0 %v2675_v43 }
0x1390   :  { %1993 = vmatprep.subr.bf16.mxu0 %v2223_v0 }
0x1393   :  { %1994 = vmatpush3.bf16.msra.mxu0 %v2684_v7 }
0x1394   :  { %1995 = vmatprep.subr.bf16.mxu0 %v2223_v0 }
0x1397   :  { %1996 = vmatpush3.bf16.msra.mxu0 %v2691_v17  ;;  %v1767_v17 = vld [vmem:[%s2834_s0 + $0x78] sm:$0xff] }
0x145d   :  { %v1480_v12 = vpop.f32.mrb[28].mxu0 }
0x145e   :  { %v1389_v32 = vpop.f32.mrb[24].mxu1  ;;  %v1987_v34 = vpop.f32.mrb[29].mxu0  ;;  %v1487_v44 = vadd.f32 %v1766_v16, %v1480_v12 }
0x145f   :  { %v1390_v35 = vadd.f32 %v2701_v19, %v1389_v32  ;;  %v1979_v14 = vpop.f32.mrb[25].mxu1  ;;  %v1483_v39 = vpop.f32.mrb[30].mxu0 }
0x1460   :  { %v1392_v43 = vpop.f32.mrb[26].mxu1  ;;  %v1988_v42 = vpop.f32.mrb[31].mxu0  ;;  %v1488_v48 = vadd.f32 %v1767_v17, %v1483_v39  ;;  %v1489_v55 = vmul.f32 0.5, %v1487_v44 }
0x1461   :  { %2179 = vtanh.f32 %v1390_v35  ;;  %v1980_v7 = vpop.f32.mrb[27].mxu1  ;;  %v1393_v45 = vadd.f32 %v2707_v6, %v1392_v43  ;;  %v1396_v28 = vmul.f32 0.5, %v1390_v35 }
0x1462   :  { %2181 = vtanh.f32 %v1487_v44  ;;  %v1490_v30 = vmul.f32 0.5, %v1488_v48 }
0x1463   :  { %2183 = vtanh.f32 %v1393_v45  ;;  %v1397_v58 = vmul.f32 0.5, %v1393_v45 }
0x1464   :  { %2185 = vtanh.f32 %v1488_v48 }
0x1465   :  { %2187 = vtanh.f32 %v1396_v28 }
0x1466   :  { %2189 = vtanh.f32 %v1489_v55 }
0x1467   :  { %2191 = vtanh.f32 %v1397_v58 }
0x1468   :  { %2193 = vtanh.f32 %v1490_v30 }
0x146b   :  { %v2180_v22 = vpop.eup %2179 }
0x146c   :  { %1410 = vrot.lane.b32.xlu0 %v2180_v22, %s2227_s30  ;;  %v2182_v50 = vpop.eup %2181 }
0x146d   :  { %v2184_v1 = vpop.eup %2183 }
0x146e   :  { %1412 = vrot.lane.b32.xlu1 %v2184_v1, %s2227_s30  ;;  %v2186_v26 = vpop.eup %2185 }
0x146f   :  { %v2188_v33 = vpop.eup %2187 }
0x1470   :  { %1503 = vrot.lane.b32.xlu0 %v2182_v50, %s2227_s30  ;;  %v1400_v59 = vmul.f32 0.5, %v2188_v33  ;;  %v2190_v41 = vpop.eup %2189 }
0x1471   :  { %v2192_v62 = vpop.eup %2191  ;;  %v1493_v47 = vmul.f32 0.5, %v2190_v41 }
0x1472   :  { %1505 = vrot.lane.b32.xlu1 %v2186_v26, %s2227_s30  ;;  %v1402_v36 = vadd.f32 0.5, %v1400_v59  ;;  %v1401_v4 = vmul.f32 0.5, %v2192_v62  ;;  %v2194_v5 = vpop.eup %2193 }
0x1473   :  { %v1495_v53 = vadd.f32 0.5, %v1493_v47  ;;  %v1494_v46 = vmul.f32 0.5, %v2194_v5 }
0x1474   :  { %v1403_v9 = vadd.f32 0.5, %v1401_v4  ;;  %v1406_v61 = vmul.f32 %v1402_v36, %v2722_v8 }
0x1475   :  { %v1496_v54 = vadd.f32 0.5, %v1494_v46  ;;  %v1499_v52 = vmul.f32 %v1495_v53, %v2727_v13  ;;  %v2021_v46 = vld [vmem:[%s2837_s4] sm:$0xff]  }
0x1476   :  { %v1407_v20 = vmul.f32 %v1403_v9, %v2729_v51  ;;  %2002 = vmatpush3.bf16.msra.mxu1 %v2021_v46 }
0x1477   :  { %v1500_v8 = vmul.f32 %v1496_v54, %v2734_v40  ;;  %2003 = vmatprep.subr.bf16.mxu1 %v2223_v0 }
0x14de   :  { %v1411_v49 = vpop.permute.xlu0 %1410 }
0x14df   :  { %v1416_v2 = vmul.f32 %v1411_v49, %v1402_v36 }
0x14e0   :  { %v1413_v15 = vpop.permute.xlu1 %1412 }
0x14e1   :  { %1420 = vrot.lane.b32.xlu0 %v1416_v2, %s2226_s25  ;;  %v1417_v56 = vmul.f32 %v1413_v15, %v1403_v9  ;;  %v2022_v15 = vld [vmem:[%s2837_s4 + $0x8] sm:$0xff]  }
0x14e2   :  { %v1504_v38 = vpop.permute.xlu0 %1503  ;;  %2004 = vmatpush3.bf16.msra.mxu1 %v2022_v15 }
0x14e3   :  { %v1509_v11 = vmul.f32 %v1504_v38, %v1495_v53  ;;  %1422 = vrot.lane.b32.xlu1 %v1417_v56, %s2226_s25 }
0x14e4   :  { %v1506_v37 = vpop.permute.xlu1 %1505 }
0x14e5   :  { %1513 = vrot.lane.b32.xlu0 %v1509_v11, %s2226_s25  ;;  %v1510_v3 = vmul.f32 %v1506_v37, %v1496_v54 }
0x14e7   :  { %1515 = vrot.lane.b32.xlu1 %v1510_v3, %s2226_s25 }
0x1553   :  { %v1421_v18 = vpop.permute.xlu0 %1420 }
0x1554   :  { %v2774_v57 = vadd.f32 %v1421_v18, %v1406_v61 }
0x1555   :  { %v1423_v21 = vpop.permute.xlu1 %1422 }
0x1556   :  { %2195 = vtanh.f32 %v2774_v57  ;;  %v2781_v23 = vadd.f32 %v1423_v21, %v1407_v20  ;;  %v1770_v20 = vld [vmem:[%s2838_s5] ss:$0 sm:$0xff] }
0x1557   :  { %v1514_v63 = vpop.permute.xlu0 %1513 }
0x1558   :  { %v2779_v60 = vadd.f32 %v1514_v63, %v1499_v52 }
0x1559   :  { %v1516_v24 = vpop.permute.xlu1 %1515 }
0x155a   :  { %2197 = vtanh.f32 %v2779_v60  ;;  %v2786_v25 = vadd.f32 %v1516_v24, %v1500_v8 }
0x155b   :  { %2199 = vtanh.f32 %v2781_v23 }
0x155c   :  { %2201 = vtanh.f32 %v2786_v25 }
0x1560   :  { %v2196_v27 = vpop.eup %2195 }
0x1561   :  { %1432 = vrot.lane.b32.xlu0 %v2196_v27, %s2227_s30 }
0x1564   :  { %v2198_v13 = vpop.eup %2197 }
0x1565   :  { %1525 = vrot.lane.b32.xlu0 %v2198_v13, %s2227_s30  ;;  %v2200_v51 = vpop.eup %2199 }
0x1566   :  { %1434 = vrot.lane.b32.xlu1 %v2200_v51, %s2227_s30  ;;  %v2202_v29 = vpop.eup %2201 }
0x156a   :  { %1527 = vrot.lane.b32.xlu1 %v2202_v29, %s2227_s30 }
0x15d3   :  { %v1433_v31 = vpop.permute.xlu0 %1432 }
0x15d4   :  { %v1438_v40 = vmul.f32 %v1433_v31, %v1402_v36 }
0x15d7   :  { %v1526_v16 = vpop.permute.xlu0 %1525 }
0x15d8   :  { %v1435_v10 = vpop.permute.xlu1 %1434  ;;  %v1531_v35 = vmul.f32 %v1526_v16, %v1495_v53 }
0x15d9   :  { %v1439_v12 = vmul.f32 %v1435_v10, %v1403_v9 }
0x15db   :  { %v1440_v32 = vpack.c.bf16 %v1439_v12, %v1438_v40 }
0x15dc   :  { %v1528_v34 = vpop.permute.xlu1 %1527 }
0x15dd   :  { %v1532_v14 = vmul.f32 %v1528_v34, %v1496_v54  ;;  %1538 = vrot.lane.b32.xlu1 %v1440_v32, %s2227_s30 }
0x15df   :  { %v1533_v39 = vpack.c.bf16 %v1532_v14, %v1531_v35 }
0x15e1   :  { %1535 = vrot.lane.b32.xlu0 %v1533_v39, %s2226_s25 }
0x164f   :  { %v1539_v43 = vpop.permute.xlu1 %1538 }
0x1653   :  { %v1536_v42 = vpop.permute.xlu0 %1535 }
0x1654   :  { %v1542_v44 = vsel %vm28_vm0, %v1536_v42, %v1539_v43  ;;  %1632 = vst.msk [vmem:[#allocation2] sm:$0xff] %vm28_vm0, %v1536_v42 }
0x1655   :  { %1998 = vmatmul.mubr.msk.bf16.vlgmr.msra.gmra.mrb[32].mxu0 %vm204_vm2, %v1542_v44 }
0x1728   :  { %v1579_v7 = vpop.f32.mrb[32].mxu0 }
0x1729   :  { %v1580_v45 = vadd.f32 %v2701_v19, %v1579_v7  ;;  %v1999_v17 = vpop.f32.mrb[33].mxu0 }
0x172a   :  { %v1582_v48 = vpop.f32.mrb[34].mxu0 }
0x172b   :  { %2203 = vtanh.f32 %v1580_v45  ;;  %v1583_v22 = vadd.f32 %v2707_v6, %v1582_v48  ;;  %v2000_v50 = vpop.f32.mrb[35].mxu0  ;;  %v1586_v28 = vmul.f32 0.5, %v1580_v45 }
0x172d   :  { %2205 = vtanh.f32 %v1583_v22  ;;  %v1587_v55 = vmul.f32 0.5, %v1583_v22 }
0x172e   :  { %2207 = vtanh.f32 %v1586_v28 }
0x172f   :  { %2209 = vtanh.f32 %v1587_v55 }
0x1735   :  { %v2204_v1 = vpop.eup %2203 }
0x1736   :  { %1600 = vrot.lane.b32.xlu0 %v2204_v1, %s2227_s30 }
0x1737   :  { %v2206_v26 = vpop.eup %2205 }
0x1738   :  { %1602 = vrot.lane.b32.xlu1 %v2206_v26, %s2227_s30  ;;  %v2208_v58 = vpop.eup %2207 }
0x1739   :  { %v2210_v30 = vpop.eup %2209  ;;  %v1590_v19 = vmul.f32 0.5, %v2208_v58 }
0x173a   :  { %v1591_v33 = vmul.f32 0.5, %v2210_v30 }
0x173b   :  { %v1592_v59 = vadd.f32 0.5, %v1590_v19 }
0x173c   :  { %v1593_v6 = vadd.f32 0.5, %v1591_v33 }
0x173d   :  { %v1596_v49 = vmul.f32 %v1592_v59, %v2774_v57 }
0x173e   :  { %v1597_v5 = vmul.f32 %v1593_v6, %v2781_v23 }
0x17a8   :  { %v1601_v41 = vpop.permute.xlu0 %1600 }
0x17a9   :  { %v1606_v62 = vmul.f32 %v1601_v41, %v1592_v59 }
0x17aa   :  { %v1603_v36 = vpop.permute.xlu1 %1602 }
0x17ab   :  { %1610 = vrot.lane.b32.xlu0 %v1606_v62, %s2226_s25  ;;  %v1607_v47 = vmul.f32 %v1603_v36, %v1593_v6 }
0x17ad   :  { %1612 = vrot.lane.b32.xlu1 %v1607_v47, %s2226_s25 }
0x181d   :  { %v1611_v2 = vpop.permute.xlu0 %1610 }
0x181e   :  { %v1616_v4 = vadd.f32 %v1611_v2, %v1596_v49 }
0x181f   :  { %v1613_v53 = vpop.permute.xlu1 %1612 }
0x1820   :  { %2211 = vtanh.f32 %v1616_v4  ;;  %v1617_v38 = vadd.f32 %v1613_v53, %v1597_v5 }
0x1822   :  { %2213 = vtanh.f32 %v1617_v38 }
0x182a   :  { %v2212_v9 = vpop.eup %2211 }
0x182b   :  { %1622 = vrot.lane.b32.xlu0 %v2212_v9, %s2227_s30 }
0x182c   :  { %v2214_v11 = vpop.eup %2213 }
0x182d   :  { %1624 = vrot.lane.b32.xlu1 %v2214_v11, %s2227_s30 }
0x1831   :  { %1635 = vrot.lane.b32.xlu1 %v2779_v60, %s2228_s1 }
0x1835   :  { %1650 = vrot.lane.b32.xlu1 %v1616_v4, %s2228_s1 }
0x189d   :  { %v1623_v56 = vpop.permute.xlu0 %1622 }
0x189e   :  { %v1628_v37 = vmul.f32 %v1623_v56, %v1592_v59 }
0x189f   :  { %v1625_v54 = vpop.permute.xlu1 %1624 }
0x18a0   :  { %v1629_v3 = vmul.f32 %v1625_v54, %v1593_v6 }
0x18a2   :  { %v1630_v61 = vpack.c.bf16 %v1629_v3, %v1628_v37 }
0x18a3   :  { %v1636_v18 = vpop.permute.xlu1 %1635 }
0x18a4   :  { %1641 = vst.msk [vmem:[#allocation3] sm:$0xff] %vm28_vm0, %v1636_v18  ;;  %1644 = vrot.lane.b32.xlu0 %v1630_v61, %s2226_s25 }
0x18a7   :  { %v1651_v57 = vpop.permute.xlu1 %1650 }
0x18a8   :  { %1656 = vst.msk [vmem:[#allocation3 + $0x10] sm:$0xff] %vm28_vm0, %v1651_v57  ;;  %1637 = vrot.lane.b32.xlu0 %v2786_v25, %s2228_s1 }
0x18ac   :  { %1652 = vrot.lane.b32.xlu0 %v1617_v38, %s2228_s1 }
0x1916   :  { %v1645_v0 = vpop.permute.xlu0 %1644 }
0x1917   :  { %1647 = vst.msk [vmem:[#allocation2 + $0x8] sm:$0xff] %vm28_vm0, %v1645_v0  ;;  %2006 = vmatmul.mubr.msk.bf16.vlgmr.msra.gmra.mrb[28].mxu1 %vm28_vm0, %v1645_v0 }
0x191a   :  { %v1638_v52 = vpop.permute.xlu0 %1637 }
0x191b   :  { %1642 = vst.msk [vmem:[#allocation3 + $0x8] sm:$0xff] %vm28_vm0, %v1638_v52 }
0x191e   :  { %v1653_v63 = vpop.permute.xlu0 %1652 }
0x191f   :  { %1657 = vst.msk [vmem:[#allocation3 + $0x18] sm:$0xff] %vm28_vm0, %v1653_v63 }
0x19ea   :  { %v1721_v60 = vpop.f32.mrb[28].mxu1 }
0x19eb   :  { %v1722_v21 = vadd.f32 %v1770_v20, %v1721_v60  ;;  %v2007_v23 = vpop.f32.mrb[29].mxu1 }
0x19ec   :  { %v1724_v8 = vpop.f32.mrb[30].mxu1 }
0x19ed   :  { %1728 = vst [vmem:[%s2839_s6] sm:$0xff] %v1722_v21  ;;  %v1725_v24 = vadd.f32 %v1770_v20, %v1724_v8  ;;  %v2008_v25 = vpop.f32.mrb[31].mxu1 }
0x19ef   :  { %1729 = vst [vmem:[%s2839_s6 + $0x8] sm:$0xff] %v1725_v24 }

</bundles_post_ra>
